<compile_context>
chip_gen: v5e
topology: v5e:2x2
jax: 0.10.0
libtpu: 0.0.40
codegen_flags: <defaults>
</compile_context>

<pallas_src>
import functools

import jax
import jax.numpy as jnp
from jax import lax
from jax.experimental import pallas as pl
from jax.experimental.pallas import tpu as pltpu

# ------------------------- config (small synthetic sizes) -------------------------
N_BATCH = 2
N_RES = 8          # L
C_S = 32
C_Z = 8
NO_HEADS = 4
C_HIDDEN = 16
NO_QK_POINTS = 4
NO_V_POINTS = 8
NO_BLOCKS = 2      # structure-module iterations
NUM_STEPS = 100    # diffusion steps (globals.num_steps)

OUT_GROUP = 128    # lane-aligned width of each fused IPA output group


# ------------------------------ geometry helpers (glue) ------------------------------
def _skew(v):
    z = jnp.zeros_like(v[..., 0])
    row0 = jnp.stack([z, -v[..., 2], v[..., 1]], axis=-1)
    row1 = jnp.stack([v[..., 2], z, -v[..., 0]], axis=-1)
    row2 = jnp.stack([-v[..., 1], v[..., 0], z], axis=-1)
    return jnp.stack([row0, row1, row2], axis=-2)


def so3vec_to_rotation(v):
    theta = jnp.sqrt(jnp.sum(v * v, axis=-1, keepdims=True) + 1e-12)
    axis = v / theta
    th = theta[..., 0]
    K = _skew(axis)
    eye = jnp.broadcast_to(jnp.eye(3, dtype=v.dtype), K.shape)
    s = jnp.sin(th)[..., None, None]
    c = (1.0 - jnp.cos(th))[..., None, None]
    return eye + s * K + c * jnp.matmul(K, K)


def rotation_to_so3vec(R):
    tr = R[..., 0, 0] + R[..., 1, 1] + R[..., 2, 2]
    cos_t = jnp.clip((tr - 1.0) * 0.5, -1.0 + 1e-6, 1.0 - 1e-6)
    theta = jnp.arccos(cos_t)
    w = jnp.stack([R[..., 2, 1] - R[..., 1, 2],
                   R[..., 0, 2] - R[..., 2, 0],
                   R[..., 1, 0] - R[..., 0, 1]], axis=-1)
    axis = w / (2.0 * jnp.sin(theta)[..., None] + 1e-8)
    return axis * theta[..., None]


def quat_to_rot(q):
    w, x, y, z = q[..., 0], q[..., 1], q[..., 2], q[..., 3]
    r0 = jnp.stack([1 - 2 * (y * y + z * z), 2 * (x * y - w * z), 2 * (x * z + w * y)], -1)
    r1 = jnp.stack([2 * (x * y + w * z), 1 - 2 * (x * x + z * z), 2 * (y * z - w * x)], -1)
    r2 = jnp.stack([2 * (x * z - w * y), 2 * (y * z + w * x), 1 - 2 * (x * x + y * y)], -1)
    return jnp.stack([r0, r1, r2], axis=-2)


def compose_update(R, t, upd):
    # upd: [N, L, 6] -> quaternion (1, b, c, d) rotation update + translation
    bcd = upd[..., :3]
    trans = upd[..., 3:]
    quat = jnp.concatenate([jnp.ones_like(bcd[..., :1]), bcd], axis=-1)
    quat = quat / jnp.linalg.norm(quat, axis=-1, keepdims=True)
    R_upd = quat_to_rot(quat)
    R_new = jnp.einsum('nlij,nljk->nlik', R, R_upd)
    t_new = jnp.einsum('nlij,nlj->nli', R, trans) + t
    return R_new, t_new


def rigid_to_4x4(R, t):
    m = jnp.zeros(R.shape[:-2] + (4, 4), R.dtype)
    m = m.at[..., :3, :3].set(R)
    m = m.at[..., :3, 3].set(t)
    m = m.at[..., 3, 3].set(1.0)
    return m


def layer_norm(x, g, b, eps=1e-5):
    mu = jnp.mean(x, axis=-1, keepdims=True)
    var = jnp.mean((x - mu) ** 2, axis=-1, keepdims=True)
    return (x - mu) * lax.rsqrt(var + eps) * g + b


# ------------------------- Pallas kernel 1: diffusion forward noise -------------------------
# Separate VMEM refs (no wrapper concat / post-slice HBM round-trips); per-batch c0/c1
# scalars live in an (N, 2) SMEM table and are read with program_id.
def _noise_kernel(c_ref, p_ref, v_ref, ep_ref, ev_ref, m_ref, pn_ref, vs_ref, es_ref):
    n = pl.program_id(0)
    c0 = c_ref[n, 0]          # sqrt(alpha_bar)
    c1 = c_ref[n, 1]          # sqrt(1 - alpha_bar)
    p = p_ref[...]
    pn_ref[...] = jnp.where(m_ref[...] > 0.5, c0 * p + c1 * ep_ref[...], p)
    vs_ref[...] = c0 * v_ref[...]
    es_ref[...] = c1 * ev_ref[...]


def add_noise_pallas(p0, v0, eps_p, eps_v, seq_mask, c0, c1):
    N, L, _ = p0.shape
    mask3 = jnp.broadcast_to(seq_mask[..., None], (N, L, 3)).astype(jnp.float32)
    c = jnp.stack([c0, c1], axis=-1).astype(jnp.float32)          # [N, 2] -> SMEM
    blk = pl.BlockSpec((1, L, 3), lambda n: (n, 0, 0))
    p_noisy, v_scaled, e_scaled = pl.pallas_call(
        _noise_kernel,
        out_shape=(jax.ShapeDtypeStruct((N, L, 3), jnp.float32),
                   jax.ShapeDtypeStruct((N, L, 3), jnp.float32),
                   jax.ShapeDtypeStruct((N, L, 3), jnp.float32)),
        grid=(N,),
        in_specs=[pl.BlockSpec(memory_space=pltpu.MemorySpace.SMEM),  # c0/c1 table
                  blk, blk, blk, blk, blk],
        out_specs=(blk, blk, blk),
        compiler_params=pltpu.CompilerParams(dimension_semantics=("parallel",)),
    )(c, p0.astype(jnp.float32), v0.astype(jnp.float32),
      eps_p.astype(jnp.float32), eps_v.astype(jnp.float32), mask3)
    return p_noisy, v_scaled, e_scaled


# ------------------------- Pallas kernel 2: Invariant Point Attention core -------------------------
def _dot_t(a, b):
    # a [M, K] . b [N, K]^T -> [M, N]  (contract last dims, no explicit transpose)
    return lax.dot_general(a, b, (((1,), (1,)), ((), ())),
                           preferred_element_type=jnp.float32)


def _ipa_kernel(q_ref, k_ref, v_ref, qp_ref, kp_ref, vp_ref, z_ref, mb_ref,
                wb_ref, hw_ref, o_ref, attn_scr, *, grp):
    # q/k/v_ref : [1, H, L, C]     bf16
    # qp/kp_ref : [1, H, L, Pq*3]  bf16 (global frame)
    # vp_ref    : [1, H, L, Pv*3]  bf16 (global frame)
    # z_ref     : [1, L, L, c_z]   bf16 (normalized pair rep)
    # mb_ref    : [1, 1, L]        f32  key mask bias (-1e9 on masked residues)
    # wb_ref    : [c_z, H]         bf16 pair-bias projection weights
    # hw_ref    : [H] in SMEM      f32  0.5 * softplus(gamma) * sqrt(1/(3*Pq*9/2))
    # o_ref     : [1, L, 3*grp]    f32  fused output, three 128-aligned groups
    # attn_scr  : VMEM [L, H, L]   f32  per-head attention probabilities
    H = q_ref.shape[1]
    L = q_ref.shape[2]
    C = q_ref.shape[3]
    c_z = z_ref.shape[3]

    z3 = z_ref[0]                        # [L, L, c_z]  (read once per grid step)
    mb = mb_ref[0]                       # [1, L]

    inv_sc = 1.0 / (3.0 * C) ** 0.5
    sqrt13 = (1.0 / 3.0) ** 0.5

    # Pair bias for ALL heads with one MXU pass over z.
    z2 = z3.reshape(L * L, c_z)
    bias3 = (sqrt13 * jnp.dot(z2, wb_ref[...],
                              preferred_element_type=jnp.float32)).reshape(L, L, H)

    o_s_list, o_pt_list = [], []
    for h in range(H):                   # static unrolled head loop, one grid step per batch
        q = q_ref[0, h]                  # [L, C]    bf16
        k = k_ref[0, h]
        v = v_ref[0, h]
        qp = qp_ref[0, h]                # [L, Pq*3] bf16
        kp = kp_ref[0, h]
        vp = vp_ref[0, h]                # [L, Pv*3] bf16

        # scalar-attention + pair-bias terms (bf16 MXU operands, f32 accumulate)
        a = _dot_t(q, k) * inv_sc + bias3[:, :, h]

        # point-distance term: sum_p ||q_p - k_p||^2 = |q|^2 + |k|^2 - 2 q.k (f32 elementwise)
        qpf = qp.astype(jnp.float32)
        kpf = kp.astype(jnp.float32)
        qsq = jnp.sum(qpf * qpf, axis=-1, keepdims=True)          # [L, 1]
        ksq = jnp.sum(kpf * kpf, axis=-1, keepdims=True)          # [L, 1]
        pt_att = qsq + ksq.T - 2.0 * _dot_t(qp, kp)
        a = a - hw_ref[h] * pt_att + mb                           # head weight from SMEM

        # softmax over keys; f32 exp (v5e-safe), denominator reciprocal on the EUP
        # TODO(synk): on v6e/v7x a bf16 exp (f32 row sum) would halve EUP cost at prod L.
        a = a - jnp.max(a, axis=-1, keepdims=True)
        e = jnp.exp(a)
        attn = e * pl.reciprocal(jnp.sum(e, axis=-1, keepdims=True), approx=True)

        # park the probs in VMEM scratch (bounds vreg live ranges, feeds the fused
        # all-heads attended-pair reduction below)
        attn_scr[:, h:h + 1, :] = attn[:, None, :]

        attn_b = attn.astype(jnp.bfloat16)
        o_s_list.append(jnp.dot(attn_b, v, preferred_element_type=jnp.float32))    # [L, C]
        o_pt_list.append(jnp.dot(attn_b, vp, preferred_element_type=jnp.float32))  # [L, Pv3]

    # Attended pair rep for ALL heads with one batched MXU dot (z read once, batch = query row).
    attn_all = attn_scr[...].astype(jnp.bfloat16)                 # [L, H, L]
    o_pair = lax.dot_general(attn_all, z3, (((2,), (1,)), ((0,), (0,))),
                             preferred_element_type=jnp.float32)  # [L, H, c_z]

    o_s_all = jnp.concatenate(o_s_list, axis=-1)                  # [L, H*C]
    o_pt_all = jnp.concatenate(o_pt_list, axis=-1)                # [L, H*Pv*3]
    o_pair_all = o_pair.reshape(L, H * c_z)                       # [L, H*c_z]

    def pad(x):
        w = grp - x.shape[-1]
        if w == 0:
            return x
        return jnp.concatenate([x, jnp.zeros((L, w), jnp.float32)], axis=-1)

    # three lane-dense, 128-aligned, full-width stores (no masked vst)
    o_ref[0, :, 0:grp] = pad(o_s_all)
    o_ref[0, :, grp:2 * grp] = pad(o_pt_all)
    o_ref[0, :, 2 * grp:3 * grp] = pad(o_pair_all)


def ipa_attention_pallas(q, k, v, qp, kp, vp, z, mask_bias, wb, head_w):
    N, H, L, C = q.shape
    c_z = z.shape[-1]
    pq3 = qp.shape[-1]
    pv3 = vp.shape[-1]
    assert max(H * C, H * pv3, H * c_z) <= OUT_GROUP, "output group exceeds 128 lanes"
    d_out = 3 * OUT_GROUP

    # TODO(synk): at production L / c_z add a key-axis grid dim ("arbitrary") with online
    # softmax and explicit vmem_limit_bytes + generation-specific key tiles (v7x 64 MiB VMEM).
    # TODO(synk): if N == 1 (inference) add a parallel query-tile axis so both v7x TCs are fed.
    return pl.pallas_call(
        functools.partial(_ipa_kernel, grp=OUT_GROUP),
        out_shape=jax.ShapeDtypeStruct((N, L, d_out), jnp.float32),
        grid=(N,),
        in_specs=[
            pl.BlockSpec((1, H, L, C), lambda n: (n, 0, 0, 0)),     # q
            pl.BlockSpec((1, H, L, C), lambda n: (n, 0, 0, 0)),     # k
            pl.BlockSpec((1, H, L, C), lambda n: (n, 0, 0, 0)),     # v
            pl.BlockSpec((1, H, L, pq3), lambda n: (n, 0, 0, 0)),   # q points (global)
            pl.BlockSpec((1, H, L, pq3), lambda n: (n, 0, 0, 0)),   # k points (global)
            pl.BlockSpec((1, H, L, pv3), lambda n: (n, 0, 0, 0)),   # v points (global)
            pl.BlockSpec((1, L, L, c_z), lambda n: (n, 0, 0, 0)),   # pair rep z
            pl.BlockSpec((1, 1, L), lambda n: (n, 0, 0)),           # key mask bias
            pl.BlockSpec((c_z, H), lambda n: (0, 0)),               # pair-bias weights
            pl.BlockSpec(memory_space=pltpu.MemorySpace.SMEM),      # per-head point weights
        ],
        out_specs=pl.BlockSpec((1, L, d_out), lambda n: (n, 0, 0)),
        scratch_shapes=[pltpu.VMEM((L, H, L), jnp.float32)],
        compiler_params=pltpu.CompilerParams(dimension_semantics=("parallel",)),
    )(q, k, v, qp, kp, vp, z, mask_bias, wb, head_w)


# ------------------------------ StructureHead (IPA-based) ------------------------------
def ipa_module(p, s, z, R, t, mask):
    N, L, _ = s.shape
    H, C, Pq, Pv = NO_HEADS, C_HIDDEN, NO_QK_POINTS, NO_V_POINTS
    bf = jnp.bfloat16

    def heads(x, c):
        # [N, L, H*c] -> [N, H, L, c]
        return x.reshape(N, L, H, c).transpose(0, 2, 1, 3)

    q = heads(s @ p['wq'], C)
    k = heads(s @ p['wk'], C)
    v = heads(s @ p['wv'], C)

    def pts_global(w, npts):
        loc = (s @ w).reshape(N, L, H, npts, 3)
        glob = jnp.einsum('nlij,nlhpj->nlhpi', R, loc) + t[:, :, None, None, :]
        return glob.transpose(0, 2, 1, 3, 4).reshape(N, H, L, npts * 3)

    qp = pts_global(p['wq_pts'], Pq)
    kp = pts_global(p['wk_pts'], Pq)
    vp = pts_global(p['wv_pts'], Pv)

    mask_bias = ((mask - 1.0) * 1e9).astype(jnp.float32)[:, None, :]          # [N, 1, L]
    wb = p['wb'].astype(bf)                                                   # [c_z, H]
    head_w = (0.5 * jax.nn.softplus(p['gamma']) *
              jnp.sqrt(1.0 / (3.0 * Pq * 9.0 / 2.0))).astype(jnp.float32)     # [H] -> SMEM

    slab = ipa_attention_pallas(q.astype(bf), k.astype(bf), v.astype(bf),
                                qp.astype(bf), kp.astype(bf), vp.astype(bf),
                                z.astype(bf), mask_bias, wb, head_w)

    hc = H * C
    hp3 = H * Pv * 3
    hcz = H * C_Z
    o_s = slab[..., 0:hc]                                                     # [N, L, H*C]
    o_pt_g = slab[..., OUT_GROUP:OUT_GROUP + hp3].reshape(N, L, H, Pv, 3)     # global points
    o_pair = slab[..., 2 * OUT_GROUP:2 * OUT_GROUP + hcz]                     # [N, L, H*c_z]

    # bring attended points back to the local frame of residue i
    o_pt_l = jnp.einsum('nlji,nlhpj->nlhpi', R, o_pt_g - t[:, :, None, None, :])
    o_pt_norm = jnp.sqrt(jnp.sum(o_pt_l ** 2, axis=-1) + 1e-8)

    cat = jnp.concatenate([o_s,
                           o_pt_l.reshape(N, L, H * Pv * 3),
                           o_pt_norm.reshape(N, L, H * Pv),
                           o_pair], axis=-1)
    return cat @ p['w_out'] + p['b_out']


def structure_head(params, s, z, R, t, mask):
    s = layer_norm(s, params['ln_s_g'], params['ln_s_b'])
    z = layer_norm(z, params['ln_z_g'], params['ln_z_b'])
    s = s @ params['w_in'] + params['b_in']

    frames = []
    for _ in range(NO_BLOCKS):
        s = s + ipa_module(params['ipa'], s, z, R, t, mask)
        s = layer_norm(s, params['ln_ipa_g'], params['ln_ipa_b'])
        s = s + (jax.nn.relu(s @ params['w_t1'] + params['b_t1']) @ params['w_t2']
                 + params['b_t2'])
        s = layer_norm(s, params['ln_t_g'], params['ln_t_b'])
        upd = s @ params['w_bb'] + params['b_bb']                    # backbone update [N, L, 6]
        R, t = compose_update(R, t, upd)
        frames.append(rigid_to_4x4(R, t))
    return {'frames': jnp.stack(frames, axis=0), 'single': s}


# ------------------------------ denoise_head forward ------------------------------
def denoise_head_forward(params, batch, s, z, time_step, noise_key):
    seq_mask = batch['decoy_seq_mask'].astype(jnp.float32)
    bb = batch['bb_rigid_tensors']
    R0 = bb[..., :3, :3]
    p0 = bb[..., :3, 3]
    v0 = rotation_to_so3vec(R0)

    ab = params['alpha_bars'][time_step]           # [N]
    c0 = jnp.sqrt(ab)
    c1 = jnp.sqrt(1.0 - ab)

    kp_, kv_ = jax.random.split(noise_key)
    eps_p = jax.random.normal(kp_, p0.shape, jnp.float32)
    eps_v = jax.random.normal(kv_, v0.shape, jnp.float32)
    # TODO(synk): rotation noise uses an isotropic Gaussian tangent-space sample instead of
    # the IGSO(3) ApproxAngularDistribution sampler used by the reference RotationTransition.

    p_noisy, v0_scaled, e_scaled = add_noise_pallas(p0, v0, eps_p, eps_v, seq_mask, c0, c1)

    # rotation forward process: R_noisy = exp(e_scaled) @ exp(c0 * v0)
    E = so3vec_to_rotation(e_scaled)
    R0_scaled = so3vec_to_rotation(v0_scaled)
    R_noisy = jnp.matmul(E, R0_scaled)
    v_noisy = rotation_to_so3vec(R_noisy)
    mask_b = seq_mask[..., None] > 0.5
    v_noisy = jnp.where(mask_b, v_noisy, v0)
    R_noisy = so3vec_to_rotation(v_noisy)

    sm = structure_head(params, s, z, R_noisy, p_noisy, seq_mask)
    return {'sm': sm, 'final_affine_tensors': sm['frames'][-1]}


# ------------------------------ deterministic parameter init ------------------------------
def init_params(key):
    keys = list(jax.random.split(key, 32))
    ki = iter(keys)

    def lin(fan_in, fan_out, scale=None):
        sc = scale if scale is not None else (1.0 / jnp.sqrt(fan_in))
        return jax.random.normal(next(ki), (fan_in, fan_out), jnp.float32) * sc

    H, C, Pq, Pv = NO_HEADS, C_HIDDEN, NO_QK_POINTS, NO_V_POINTS
    concat_dim = H * C + H * Pv * 3 + H * Pv + H * C_Z
    ipa = {
        'wq': lin(C_S, H * C),
        'wk': lin(C_S, H * C),
        'wv': lin(C_S, H * C),
        'wq_pts': lin(C_S, H * Pq * 3),
        'wk_pts': lin(C_S, H * Pq * 3),
        'wv_pts': lin(C_S, H * Pv * 3),
        'wb': lin(C_Z, H),
        'gamma': jnp.full((H,), 0.541324854, jnp.float32),   # softplus(gamma) ~= 1
        'w_out': lin(concat_dim, C_S),
        'b_out': jnp.zeros((C_S,), jnp.float32),
    }
    params = {
        'ipa': ipa,
        'ln_s_g': jnp.ones((C_S,), jnp.float32), 'ln_s_b': jnp.zeros((C_S,), jnp.float32),
        'ln_z_g': jnp.ones((C_Z,), jnp.float32), 'ln_z_b': jnp.zeros((C_Z,), jnp.float32),
        'ln_ipa_g': jnp.ones((C_S,), jnp.float32), 'ln_ipa_b': jnp.zeros((C_S,), jnp.float32),
        'ln_t_g': jnp.ones((C_S,), jnp.float32), 'ln_t_b': jnp.zeros((C_S,), jnp.float32),
        'w_in': lin(C_S, C_S), 'b_in': jnp.zeros((C_S,), jnp.float32),
        'w_t1': lin(C_S, C_S), 'b_t1': jnp.zeros((C_S,), jnp.float32),
        'w_t2': lin(C_S, C_S), 'b_t2': jnp.zeros((C_S,), jnp.float32),
        'w_bb': lin(C_S, 6, scale=0.02), 'b_bb': jnp.zeros((6,), jnp.float32),
    }
    # forward-diffusion variance schedule (VarianceSchedule equivalent)
    betas = jnp.linspace(1e-4, 0.02, NUM_STEPS, dtype=jnp.float32)
    params['alpha_bars'] = jnp.cumprod(1.0 - betas)
    return params


# ------------------------------ main ------------------------------
if __name__ == "__main__":
    key = jax.random.PRNGKey(0)
    k_param, k_s, k_z, k_rot, k_trans, k_t, k_noise = jax.random.split(key, 7)

    N, L = N_BATCH, N_RES
    params = init_params(k_param)

    s = jax.random.normal(k_s, (N, L, C_S), jnp.float32)
    z = jax.random.normal(k_z, (N, L, L, C_Z), jnp.float32)

    v_rand = jax.random.normal(k_rot, (N, L, 3), jnp.float32)
    R_init = so3vec_to_rotation(v_rand)
    t_init = jax.random.normal(k_trans, (N, L, 3), jnp.float32)
    bb_rigid_tensors = rigid_to_4x4(R_init, t_init)

    batch = {
        'decoy_seq_mask': jnp.ones((N, L), jnp.float32),
        'bb_rigid_tensors': bb_rigid_tensors,
    }
    # forward() samples time_step ~ randint(0, num_steps) when not provided
    time_step = jax.random.randint(k_t, (N,), 0, NUM_STEPS)

    fwd = jax.jit(denoise_head_forward)
    out = fwd(params, batch, s, z, time_step, k_noise)
    jax.block_until_ready(out)

    assert out['final_affine_tensors'].shape == (N, L, 4, 4)
    assert out['sm']['frames'].shape == (NO_BLOCKS, N, L, 4, 4)
    assert bool(jnp.all(jnp.isfinite(out['final_affine_tensors'])))
    print("KERNEL_OK")
</pallas_src>

<mosaic_0001>
module attributes {stable_mosaic.version = 11 : i64} {
  func.func @_noise_kernel(%arg0: i32, %arg1: memref<2x2xf32, #tpu.memory_space<smem>>, %arg2: memref<1x8x3xf32, #tpu.memory_space<vmem>>, %arg3: memref<1x8x3xf32, #tpu.memory_space<vmem>>, %arg4: memref<1x8x3xf32, #tpu.memory_space<vmem>>, %arg5: memref<1x8x3xf32, #tpu.memory_space<vmem>>, %arg6: memref<1x8x3xf32, #tpu.memory_space<vmem>>, %arg7: memref<1x8x3xf32, #tpu.memory_space<vmem>>, %arg8: memref<1x8x3xf32, #tpu.memory_space<vmem>>, %arg9: memref<1x8x3xf32, #tpu.memory_space<vmem>>) attributes {dimension_semantics = [#tpu.dimension_semantics<parallel>], iteration_bounds = array<i64: 2>, scalar_prefetch = 0 : i64, scratch_operands = 0 : i64, tpu.core_type = #tpu.core_type<tc>, window_params = [{transform_indices = @transform_0, window_bounds = array<i64: 2, 2>}, {transform_indices = @transform_1, window_bounds = array<i64: 1, 8, 3>}, {transform_indices = @transform_2, window_bounds = array<i64: 1, 8, 3>}, {transform_indices = @transform_3, window_bounds = array<i64: 1, 8, 3>}, {transform_indices = @transform_4, window_bounds = array<i64: 1, 8, 3>}, {transform_indices = @transform_5, window_bounds = array<i64: 1, 8, 3>}, {transform_indices = @transform_6, window_bounds = array<i64: 1, 8, 3>}, {transform_indices = @transform_7, window_bounds = array<i64: 1, 8, 3>}, {transform_indices = @transform_8, window_bounds = array<i64: 1, 8, 3>}]} {
    %0 = arith.index_cast %arg0 : i32 to index
    %c0 = arith.constant 0 : index
    %1 = memref.load %arg1[%0, %c0] : memref<2x2xf32, #tpu.memory_space<smem>>
    %2 = arith.index_cast %arg0 : i32 to index
    %c1 = arith.constant 1 : index
    %3 = memref.load %arg1[%2, %c1] : memref<2x2xf32, #tpu.memory_space<smem>>
    %c0_0 = arith.constant 0 : index
    %c0_1 = arith.constant 0 : index
    %c0_2 = arith.constant 0 : index
    %4 = vector.load %arg2[%c0_0, %c0_1, %c0_2] : memref<1x8x3xf32, #tpu.memory_space<vmem>>, vector<1x8x3xf32>
    %c0_3 = arith.constant 0 : index
    %c0_4 = arith.constant 0 : index
    %c0_5 = arith.constant 0 : index
    %5 = vector.load %arg6[%c0_3, %c0_4, %c0_5] : memref<1x8x3xf32, #tpu.memory_space<vmem>>, vector<1x8x3xf32>
    %cst = arith.constant 5.000000e-01 : f32
    %6 = vector.broadcast %cst : f32 to vector<1x8x3xf32>
    %7 = arith.cmpf ogt, %5, %6 : vector<1x8x3xf32>
    %8 = vector.broadcast %1 : f32 to vector<1x8x3xf32>
    %9 = arith.mulf %8, %4 : vector<1x8x3xf32>
    %c0_6 = arith.constant 0 : index
    %c0_7 = arith.constant 0 : index
    %c0_8 = arith.constant 0 : index
    %10 = vector.load %arg4[%c0_6, %c0_7, %c0_8] : memref<1x8x3xf32, #tpu.memory_space<vmem>>, vector<1x8x3xf32>
    %11 = vector.broadcast %3 : f32 to vector<1x8x3xf32>
    %12 = arith.mulf %11, %10 : vector<1x8x3xf32>
    %13 = arith.addf %9, %12 : vector<1x8x3xf32>
    %14 = arith.select %7, %13, %4 : vector<1x8x3xi1>, vector<1x8x3xf32>
    %c0_9 = arith.constant 0 : index
    %c0_10 = arith.constant 0 : index
    %c0_11 = arith.constant 0 : index
    %15 = vector.load %arg7[%c0_9, %c0_10, %c0_11] : memref<1x8x3xf32, #tpu.memory_space<vmem>>, vector<1x8x3xf32>
    tpu.vector_store %arg7[%c0_9, %c0_10, %c0_11], %14 {strides = array<i32>} : memref<1x8x3xf32, #tpu.memory_space<vmem>>, vector<1x8x3xf32>,
    %c0_12 = arith.constant 0 : index
    %c0_13 = arith.constant 0 : index
    %c0_14 = arith.constant 0 : index
    %16 = vector.load %arg3[%c0_12, %c0_13, %c0_14] : memref<1x8x3xf32, #tpu.memory_space<vmem>>, vector<1x8x3xf32>
    %17 = vector.broadcast %1 : f32 to vector<1x8x3xf32>
    %18 = arith.mulf %17, %16 : vector<1x8x3xf32>
    %c0_15 = arith.constant 0 : index
    %c0_16 = arith.constant 0 : index
    %c0_17 = arith.constant 0 : index
    %19 = vector.load %arg8[%c0_15, %c0_16, %c0_17] : memref<1x8x3xf32, #tpu.memory_space<vmem>>, vector<1x8x3xf32>
    tpu.vector_store %arg8[%c0_15, %c0_16, %c0_17], %18 {strides = array<i32>} : memref<1x8x3xf32, #tpu.memory_space<vmem>>, vector<1x8x3xf32>,
    %c0_18 = arith.constant 0 : index
    %c0_19 = arith.constant 0 : index
    %c0_20 = arith.constant 0 : index
    %20 = vector.load %arg5[%c0_18, %c0_19, %c0_20] : memref<1x8x3xf32, #tpu.memory_space<vmem>>, vector<1x8x3xf32>
    %21 = vector.broadcast %3 : f32 to vector<1x8x3xf32>
    %22 = arith.mulf %21, %20 : vector<1x8x3xf32>
    %c0_21 = arith.constant 0 : index
    %c0_22 = arith.constant 0 : index
    %c0_23 = arith.constant 0 : index
    %23 = vector.load %arg9[%c0_21, %c0_22, %c0_23] : memref<1x8x3xf32, #tpu.memory_space<vmem>>, vector<1x8x3xf32>
    tpu.vector_store %arg9[%c0_21, %c0_22, %c0_23], %22 {strides = array<i32>} : memref<1x8x3xf32, #tpu.memory_space<vmem>>, vector<1x8x3xf32>,
    return
  }
  func.func @transform_0(%arg0: i32) -> (i32, i32) {
    %c0_i32 = arith.constant 0 : i32
    %c0_i32_0 = arith.constant 0 : i32
    %c0_i32_1 = arith.constant 0 : i32
    return %c0_i32, %c0_i32_0 : i32, i32
  }
  func.func @transform_1(%arg0: i32) -> (i32, i32, i32) {
    %c0_i32 = arith.constant 0 : i32
    %c0_i32_0 = arith.constant 0 : i32
    %c0_i32_1 = arith.constant 0 : i32
    return %arg0, %c0_i32, %c0_i32_0 : i32, i32, i32
  }
  func.func @transform_2(%arg0: i32) -> (i32, i32, i32) {
    %c0_i32 = arith.constant 0 : i32
    %c0_i32_0 = arith.constant 0 : i32
    %c0_i32_1 = arith.constant 0 : i32
    return %arg0, %c0_i32, %c0_i32_0 : i32, i32, i32
  }
  func.func @transform_3(%arg0: i32) -> (i32, i32, i32) {
    %c0_i32 = arith.constant 0 : i32
    %c0_i32_0 = arith.constant 0 : i32
    %c0_i32_1 = arith.constant 0 : i32
    return %arg0, %c0_i32, %c0_i32_0 : i32, i32, i32
  }
  func.func @transform_4(%arg0: i32) -> (i32, i32, i32) {
    %c0_i32 = arith.constant 0 : i32
    %c0_i32_0 = arith.constant 0 : i32
    %c0_i32_1 = arith.constant 0 : i32
    return %arg0, %c0_i32, %c0_i32_0 : i32, i32, i32
  }
  func.func @transform_5(%arg0: i32) -> (i32, i32, i32) {
    %c0_i32 = arith.constant 0 : i32
    %c0_i32_0 = arith.constant 0 : i32
    %c0_i32_1 = arith.constant 0 : i32
    return %arg0, %c0_i32, %c0_i32_0 : i32, i32, i32
  }
  func.func @transform_6(%arg0: i32) -> (i32, i32, i32) {
    %c0_i32 = arith.constant 0 : i32
    %c0_i32_0 = arith.constant 0 : i32
    %c0_i32_1 = arith.constant 0 : i32
    return %arg0, %c0_i32, %c0_i32_0 : i32, i32, i32
  }
  func.func @transform_7(%arg0: i32) -> (i32, i32, i32) {
    %c0_i32 = arith.constant 0 : i32
    %c0_i32_0 = arith.constant 0 : i32
    %c0_i32_1 = arith.constant 0 : i32
    return %arg0, %c0_i32, %c0_i32_0 : i32, i32, i32
  }
  func.func @transform_8(%arg0: i32) -> (i32, i32, i32) {
    %c0_i32 = arith.constant 0 : i32
    %c0_i32_0 = arith.constant 0 : i32
    %c0_i32_1 = arith.constant 0 : i32
    return %arg0, %c0_i32, %c0_i32_0 : i32, i32, i32
  }
}

module attributes {stable_mosaic.version = 11 : i64} {
  func.func @_ipa_kernel(%arg0: i32, %arg1: memref<1x4x8x16xbf16, #tpu.memory_space<vmem>>, %arg2: memref<1x4x8x16xbf16, #tpu.memory_space<vmem>>, %arg3: memref<1x4x8x16xbf16, #tpu.memory_space<vmem>>, %arg4: memref<1x4x8x12xbf16, #tpu.memory_space<vmem>>, %arg5: memref<1x4x8x12xbf16, #tpu.memory_space<vmem>>, %arg6: memref<1x4x8x24xbf16, #tpu.memory_space<vmem>>, %arg7: memref<1x8x8x8xbf16, #tpu.memory_space<vmem>>, %arg8: memref<1x1x8xf32, #tpu.memory_space<vmem>>, %arg9: memref<8x4xbf16, #tpu.memory_space<vmem>>, %arg10: memref<4xf32, #tpu.memory_space<smem>>, %arg11: memref<1x8x384xf32, #tpu.memory_space<vmem>>, %arg12: memref<8x4x8xf32, #tpu.memory_space<vmem>>) attributes {dimension_semantics = [#tpu.dimension_semantics<parallel>], iteration_bounds = array<i64: 2>, scalar_prefetch = 0 : i64, scratch_operands = 1 : i64, tpu.core_type = #tpu.core_type<tc>, window_params = [{transform_indices = @transform_0, window_bounds = array<i64: 1, 4, 8, 16>}, {transform_indices = @transform_1, window_bounds = array<i64: 1, 4, 8, 16>}, {transform_indices = @transform_2, window_bounds = array<i64: 1, 4, 8, 16>}, {transform_indices = @transform_3, window_bounds = array<i64: 1, 4, 8, 12>}, {transform_indices = @transform_4, window_bounds = array<i64: 1, 4, 8, 12>}, {transform_indices = @transform_5, window_bounds = array<i64: 1, 4, 8, 24>}, {transform_indices = @transform_6, window_bounds = array<i64: 1, 8, 8, 8>}, {transform_indices = @transform_7, window_bounds = array<i64: 1, 1, 8>}, {pipeline_mode = #tpu.pipeline_mode<synchronous>, transform_indices = @transform_8, window_bounds = array<i64: 8, 4>}, {transform_indices = @transform_9, window_bounds = array<i64: 4>}, {transform_indices = @transform_10, window_bounds = array<i64: 1, 8, 384>}]} {
    %c0 = arith.constant 0 : index
    %c0_0 = arith.constant 0 : index
    %c0_1 = arith.constant 0 : index
    %c0_2 = arith.constant 0 : index
    %0 = vector.load %arg7[%c0, %c0_0, %c0_1, %c0_2] : memref<1x8x8x8xbf16, #tpu.memory_space<vmem>>, vector<1x8x8x8xbf16>
    %1 = vector.shape_cast %0 : vector<1x8x8x8xbf16> to vector<8x8x8xbf16>
    %c0_3 = arith.constant 0 : index
    %c0_4 = arith.constant 0 : index
    %c0_5 = arith.constant 0 : index
    %2 = vector.load %arg8[%c0_3, %c0_4, %c0_5] : memref<1x1x8xf32, #tpu.memory_space<vmem>>, vector<1x1x8xf32>
    %3 = vector.shape_cast %2 : vector<1x1x8xf32> to vector<1x8xf32>
    %4 = vector.shape_cast %1 : vector<8x8x8xbf16> to vector<64x8xbf16>
    %c0_6 = arith.constant 0 : index
    %c0_7 = arith.constant 0 : index
    %5 = vector.load %arg9[%c0_6, %c0_7] : memref<8x4xbf16, #tpu.memory_space<vmem>>, vector<8x4xbf16>
    %cst = arith.constant dense<0.000000e+00> : vector<64x4xf32>
    %6 = tpu.matmul %4, %5, %cst {dimension_numbers = #tpu.dot_dimension_numbers<[1], [0], [0], [1], [0, 0, 1, 1], [], []>} : vector<64x8xbf16>, vector<8x4xbf16>, vector<64x4xf32> -> vector<64x4xf32>
    %cst_8 = arith.constant 0.577350259 : f32
    %7 = vector.broadcast %cst_8 : f32 to vector<64x4xf32>
    %8 = arith.mulf %7, %6 : vector<64x4xf32>
    %9 = vector.shape_cast %8 : vector<64x4xf32> to vector<8x8x4xf32>
    %c0_9 = arith.constant 0 : index
    %c0_10 = arith.constant 0 : index
    %c0_11 = arith.constant 0 : index
    %c0_12 = arith.constant 0 : index
    %10 = vector.load %arg1[%c0_9, %c0_10, %c0_11, %c0_12] : memref<1x4x8x16xbf16, #tpu.memory_space<vmem>>, vector<1x1x8x16xbf16>
    %11 = vector.shape_cast %10 : vector<1x1x8x16xbf16> to vector<8x16xbf16>
    %c0_13 = arith.constant 0 : index
    %c0_14 = arith.constant 0 : index
    %c0_15 = arith.constant 0 : index
    %c0_16 = arith.constant 0 : index
    %12 = vector.load %arg2[%c0_13, %c0_14, %c0_15, %c0_16] : memref<1x4x8x16xbf16, #tpu.memory_space<vmem>>, vector<1x1x8x16xbf16>
    %13 = vector.shape_cast %12 : vector<1x1x8x16xbf16> to vector<8x16xbf16>
    %c0_17 = arith.constant 0 : index
    %c0_18 = arith.constant 0 : index
    %c0_19 = arith.constant 0 : index
    %c0_20 = arith.constant 0 : index
    %14 = vector.load %arg3[%c0_17, %c0_18, %c0_19, %c0_20] : memref<1x4x8x16xbf16, #tpu.memory_space<vmem>>, vector<1x1x8x16xbf16>
    %15 = vector.shape_cast %14 : vector<1x1x8x16xbf16> to vector<8x16xbf16>
    %c0_21 = arith.constant 0 : index
    %c0_22 = arith.constant 0 : index
    %c0_23 = arith.constant 0 : index
    %c0_24 = arith.constant 0 : index
    %16 = vector.load %arg4[%c0_21, %c0_22, %c0_23, %c0_24] : memref<1x4x8x12xbf16, #tpu.memory_space<vmem>>, vector<1x1x8x12xbf16>
    %17 = vector.shape_cast %16 : vector<1x1x8x12xbf16> to vector<8x12xbf16>
    %c0_25 = arith.constant 0 : index
    %c0_26 = arith.constant 0 : index
    %c0_27 = arith.constant 0 : index
    %c0_28 = arith.constant 0 : index
    %18 = vector.load %arg5[%c0_25, %c0_26, %c0_27, %c0_28] : memref<1x4x8x12xbf16, #tpu.memory_space<vmem>>, vector<1x1x8x12xbf16>
    %19 = vector.shape_cast %18 : vector<1x1x8x12xbf16> to vector<8x12xbf16>
    %c0_29 = arith.constant 0 : index
    %c0_30 = arith.constant 0 : index
    %c0_31 = arith.constant 0 : index
    %c0_32 = arith.constant 0 : index
    %20 = vector.load %arg6[%c0_29, %c0_30, %c0_31, %c0_32] : memref<1x4x8x24xbf16, #tpu.memory_space<vmem>>, vector<1x1x8x24xbf16>
    %21 = vector.shape_cast %20 : vector<1x1x8x24xbf16> to vector<8x24xbf16>
    %cst_33 = arith.constant dense<0.000000e+00> : vector<8x8xf32>
    %22 = tpu.matmul %11, %13, %cst_33 {dimension_numbers = #tpu.dot_dimension_numbers<[1], [1], [0], [0], [0, 0, 1, 0], [], []>} : vector<8x16xbf16>, vector<8x16xbf16>, vector<8x8xf32> -> vector<8x8xf32>
    %cst_34 = arith.constant 0.144337565 : f32
    %23 = vector.broadcast %cst_34 : f32 to vector<8x8xf32>
    %24 = arith.mulf %22, %23 : vector<8x8xf32>
    %25 = vector.extract_strided_slice %9 {offsets = [0, 0, 0], sizes = [8, 8, 1], strides = [1, 1, 1]} : vector<8x8x4xf32> to vector<8x8x1xf32>
    %26 = vector.shape_cast %25 : vector<8x8x1xf32> to vector<8x8xf32>
    %27 = arith.addf %24, %26 : vector<8x8xf32>
    %28 = arith.extf %17 : vector<8x12xbf16> to vector<8x12xf32>
    %29 = arith.extf %19 : vector<8x12xbf16> to vector<8x12xf32>
    %30 = arith.mulf %28, %28 : vector<8x12xf32>
    %cst_35 = arith.constant dense<0.000000e+00> : vector<8xf32>
    %31 = vector.multi_reduction <add>, %30, %cst_35 [1] : vector<8x12xf32> to vector<8xf32>
    %32 = vector.shape_cast %31 : vector<8xf32> to vector<8x1xf32>
    %33 = arith.mulf %29, %29 : vector<8x12xf32>
    %cst_36 = arith.constant dense<0.000000e+00> : vector<8xf32>
    %34 = vector.multi_reduction <add>, %33, %cst_36 [1] : vector<8x12xf32> to vector<8xf32>
    %35 = vector.shape_cast %34 : vector<8xf32> to vector<8x1xf32>
    %36 = tpu.transpose %35, [1, 0] : vector<8x1xf32> -> vector<1x8xf32>
    %37 = vector.broadcast %32 : vector<8x1xf32> to vector<8x8xf32>
    %38 = vector.broadcast %36 : vector<1x8xf32> to vector<8x8xf32>
    %39 = arith.addf %37, %38 : vector<8x8xf32>
    %cst_37 = arith.constant dense<0.000000e+00> : vector<8x8xf32>
    %40 = tpu.matmul %17, %19, %cst_37 {dimension_numbers = #tpu.dot_dimension_numbers<[1], [1], [0], [0], [0, 0, 1, 0], [], []>} : vector<8x12xbf16>, vector<8x12xbf16>, vector<8x8xf32> -> vector<8x8xf32>
    %cst_38 = arith.constant 2.000000e+00 : f32
    %41 = vector.broadcast %cst_38 : f32 to vector<8x8xf32>
    %42 = arith.mulf %41, %40 : vector<8x8xf32>
    %43 = arith.subf %39, %42 : vector<8x8xf32>
    %c0_39 = arith.constant 0 : index
    %44 = memref.load %arg10[%c0_39] : memref<4xf32, #tpu.memory_space<smem>>
    %45 = vector.broadcast %44 : f32 to vector<8x8xf32>
    %46 = arith.mulf %45, %43 : vector<8x8xf32>
    %47 = arith.subf %27, %46 : vector<8x8xf32>
    %48 = vector.broadcast %3 : vector<1x8xf32> to vector<8x8xf32>
    %49 = arith.addf %47, %48 : vector<8x8xf32>
    %cst_40 = arith.constant dense<0xFF800000> : vector<8xf32>
    %50 = vector.multi_reduction <maximumf>, %49, %cst_40 [1] : vector<8x8xf32> to vector<8xf32>
    %51 = vector.shape_cast %50 : vector<8xf32> to vector<8x1xf32>
    %52 = vector.broadcast %51 : vector<8x1xf32> to vector<8x8xf32>
    %53 = arith.subf %49, %52 : vector<8x8xf32>
    %54 = math.exp %53 : vector<8x8xf32>
    %cst_41 = arith.constant dense<0.000000e+00> : vector<8xf32>
    %55 = vector.multi_reduction <add>, %54, %cst_41 [1] : vector<8x8xf32> to vector<8xf32>
    %56 = vector.shape_cast %55 : vector<8xf32> to vector<8x1xf32>
    %57 = tpu.reciprocal %56 {approx = true} : vector<8x1xf32> -> vector<8x1xf32>
    %58 = vector.broadcast %57 : vector<8x1xf32> to vector<8x8xf32>
    %59 = arith.mulf %54, %58 : vector<8x8xf32>
    %60 = vector.shape_cast %59 : vector<8x8xf32> to vector<8x1x8xf32>
    %c0_42 = arith.constant 0 : index
    %c0_43 = arith.constant 0 : index
    %c0_44 = arith.constant 0 : index
    %61 = vector.load %arg12[%c0_42, %c0_43, %c0_44] : memref<8x4x8xf32, #tpu.memory_space<vmem>>, vector<8x1x8xf32>
    tpu.vector_store %arg12[%c0_42, %c0_43, %c0_44], %60 {strides = array<i32>} : memref<8x4x8xf32, #tpu.memory_space<vmem>>, vector<8x1x8xf32>,
    %62 = arith.truncf %59 : vector<8x8xf32> to vector<8x8xbf16>
    %cst_45 = arith.constant dense<0.000000e+00> : vector<8x16xf32>
    %63 = tpu.matmul %62, %15, %cst_45 {dimension_numbers = #tpu.dot_dimension_numbers<[1], [0], [0], [1], [0, 0, 1, 1], [], []>} : vector<8x8xbf16>, vector<8x16xbf16>, vector<8x16xf32> -> vector<8x16xf32>
    %cst_46 = arith.constant dense<0.000000e+00> : vector<8x24xf32>
    %64 = tpu.matmul %62, %21, %cst_46 {dimension_numbers = #tpu.dot_dimension_numbers<[1], [0], [0], [1], [0, 0, 1, 1], [], []>} : vector<8x8xbf16>, vector<8x24xbf16>, vector<8x24xf32> -> vector<8x24xf32>
    %c0_47 = arith.constant 0 : index
    %c1 = arith.constant 1 : index
    %c0_48 = arith.constant 0 : index
    %c0_49 = arith.constant 0 : index
    %65 = vector.load %arg1[%c0_47, %c1, %c0_48, %c0_49] : memref<1x4x8x16xbf16, #tpu.memory_space<vmem>>, vector<1x1x8x16xbf16>
    %66 = vector.shape_cast %65 : vector<1x1x8x16xbf16> to vector<8x16xbf16>
    %c0_50 = arith.constant 0 : index
    %c1_51 = arith.constant 1 : index
    %c0_52 = arith.constant 0 : index
    %c0_53 = arith.constant 0 : index
    %67 = vector.load %arg2[%c0_50, %c1_51, %c0_52, %c0_53] : memref<1x4x8x16xbf16, #tpu.memory_space<vmem>>, vector<1x1x8x16xbf16>
    %68 = vector.shape_cast %67 : vector<1x1x8x16xbf16> to vector<8x16xbf16>
    %c0_54 = arith.constant 0 : index
    %c1_55 = arith.constant 1 : index
    %c0_56 = arith.constant 0 : index
    %c0_57 = arith.constant 0 : index
    %69 = vector.load %arg3[%c0_54, %c1_55, %c0_56, %c0_57] : memref<1x4x8x16xbf16, #tpu.memory_space<vmem>>, vector<1x1x8x16xbf16>
    %70 = vector.shape_cast %69 : vector<1x1x8x16xbf16> to vector<8x16xbf16>
    %c0_58 = arith.constant 0 : index
    %c1_59 = arith.constant 1 : index
    %c0_60 = arith.constant 0 : index
    %c0_61 = arith.constant 0 : index
    %71 = vector.load %arg4[%c0_58, %c1_59, %c0_60, %c0_61] : memref<1x4x8x12xbf16, #tpu.memory_space<vmem>>, vector<1x1x8x12xbf16>
    %72 = vector.shape_cast %71 : vector<1x1x8x12xbf16> to vector<8x12xbf16>
    %c0_62 = arith.constant 0 : index
    %c1_63 = arith.constant 1 : index
    %c0_64 = arith.constant 0 : index
    %c0_65 = arith.constant 0 : index
    %73 = vector.load %arg5[%c0_62, %c1_63, %c0_64, %c0_65] : memref<1x4x8x12xbf16, #tpu.memory_space<vmem>>, vector<1x1x8x12xbf16>
    %74 = vector.shape_cast %73 : vector<1x1x8x12xbf16> to vector<8x12xbf16>
    %c0_66 = arith.constant 0 : index
    %c1_67 = arith.constant 1 : index
    %c0_68 = arith.constant 0 : index
    %c0_69 = arith.constant 0 : index
    %75 = vector.load %arg6[%c0_66, %c1_67, %c0_68, %c0_69] : memref<1x4x8x24xbf16, #tpu.memory_space<vmem>>, vector<1x1x8x24xbf16>
    %76 = vector.shape_cast %75 : vector<1x1x8x24xbf16> to vector<8x24xbf16>
    %cst_70 = arith.constant dense<0.000000e+00> : vector<8x8xf32>
    %77 = tpu.matmul %66, %68, %cst_70 {dimension_numbers = #tpu.dot_dimension_numbers<[1], [1], [0], [0], [0, 0, 1, 0], [], []>} : vector<8x16xbf16>, vector<8x16xbf16>, vector<8x8xf32> -> vector<8x8xf32>
    %cst_71 = arith.constant 0.144337565 : f32
    %78 = vector.broadcast %cst_71 : f32 to vector<8x8xf32>
    %79 = arith.mulf %77, %78 : vector<8x8xf32>
    %80 = vector.extract_strided_slice %9 {offsets = [0, 0, 1], sizes = [8, 8, 1], strides = [1, 1, 1]} : vector<8x8x4xf32> to vector<8x8x1xf32>
    %81 = vector.shape_cast %80 : vector<8x8x1xf32> to vector<8x8xf32>
    %82 = arith.addf %79, %81 : vector<8x8xf32>
    %83 = arith.extf %72 : vector<8x12xbf16> to vector<8x12xf32>
    %84 = arith.extf %74 : vector<8x12xbf16> to vector<8x12xf32>
    %85 = arith.mulf %83, %83 : vector<8x12xf32>
    %cst_72 = arith.constant dense<0.000000e+00> : vector<8xf32>
    %86 = vector.multi_reduction <add>, %85, %cst_72 [1] : vector<8x12xf32> to vector<8xf32>
    %87 = vector.shape_cast %86 : vector<8xf32> to vector<8x1xf32>
    %88 = arith.mulf %84, %84 : vector<8x12xf32>
    %cst_73 = arith.constant dense<0.000000e+00> : vector<8xf32>
    %89 = vector.multi_reduction <add>, %88, %cst_73 [1] : vector<8x12xf32> to vector<8xf32>
    %90 = vector.shape_cast %89 : vector<8xf32> to vector<8x1xf32>
    %91 = tpu.transpose %90, [1, 0] : vector<8x1xf32> -> vector<1x8xf32>
    %92 = vector.broadcast %87 : vector<8x1xf32> to vector<8x8xf32>
    %93 = vector.broadcast %91 : vector<1x8xf32> to vector<8x8xf32>
    %94 = arith.addf %92, %93 : vector<8x8xf32>
    %cst_74 = arith.constant dense<0.000000e+00> : vector<8x8xf32>
    %95 = tpu.matmul %72, %74, %cst_74 {dimension_numbers = #tpu.dot_dimension_numbers<[1], [1], [0], [0], [0, 0, 1, 0], [], []>} : vector<8x12xbf16>, vector<8x12xbf16>, vector<8x8xf32> -> vector<8x8xf32>
    %cst_75 = arith.constant 2.000000e+00 : f32
    %96 = vector.broadcast %cst_75 : f32 to vector<8x8xf32>
    %97 = arith.mulf %96, %95 : vector<8x8xf32>
    %98 = arith.subf %94, %97 : vector<8x8xf32>
    %c1_76 = arith.constant 1 : index
    %99 = memref.load %arg10[%c1_76] : memref<4xf32, #tpu.memory_space<smem>>
    %100 = vector.broadcast %99 : f32 to vector<8x8xf32>
    %101 = arith.mulf %100, %98 : vector<8x8xf32>
    %102 = arith.subf %82, %101 : vector<8x8xf32>
    %103 = vector.broadcast %3 : vector<1x8xf32> to vector<8x8xf32>
    %104 = arith.addf %102, %103 : vector<8x8xf32>
    %cst_77 = arith.constant dense<0xFF800000> : vector<8xf32>
    %105 = vector.multi_reduction <maximumf>, %104, %cst_77 [1] : vector<8x8xf32> to vector<8xf32>
    %106 = vector.shape_cast %105 : vector<8xf32> to vector<8x1xf32>
    %107 = vector.broadcast %106 : vector<8x1xf32> to vector<8x8xf32>
    %108 = arith.subf %104, %107 : vector<8x8xf32>
    %109 = math.exp %108 : vector<8x8xf32>
    %cst_78 = arith.constant dense<0.000000e+00> : vector<8xf32>
    %110 = vector.multi_reduction <add>, %109, %cst_78 [1] : vector<8x8xf32> to vector<8xf32>
    %111 = vector.shape_cast %110 : vector<8xf32> to vector<8x1xf32>
    %112 = tpu.reciprocal %111 {approx = true} : vector<8x1xf32> -> vector<8x1xf32>
    %113 = vector.broadcast %112 : vector<8x1xf32> to vector<8x8xf32>
    %114 = arith.mulf %109, %113 : vector<8x8xf32>
    %115 = vector.shape_cast %114 : vector<8x8xf32> to vector<8x1x8xf32>
    %c0_79 = arith.constant 0 : index
    %c1_80 = arith.constant 1 : index
    %c0_81 = arith.constant 0 : index
    %116 = vector.load %arg12[%c0_79, %c1_80, %c0_81] : memref<8x4x8xf32, #tpu.memory_space<vmem>>, vector<8x1x8xf32>
    tpu.vector_store %arg12[%c0_79, %c1_80, %c0_81], %115 {strides = array<i32>} : memref<8x4x8xf32, #tpu.memory_space<vmem>>, vector<8x1x8xf32>,
    %117 = arith.truncf %114 : vector<8x8xf32> to vector<8x8xbf16>
    %cst_82 = arith.constant dense<0.000000e+00> : vector<8x16xf32>
    %118 = tpu.matmul %117, %70, %cst_82 {dimension_numbers = #tpu.dot_dimension_numbers<[1], [0], [0], [1], [0, 0, 1, 1], [], []>} : vector<8x8xbf16>, vector<8x16xbf16>, vector<8x16xf32> -> vector<8x16xf32>
    %cst_83 = arith.constant dense<0.000000e+00> : vector<8x24xf32>
    %119 = tpu.matmul %117, %76, %cst_83 {dimension_numbers = #tpu.dot_dimension_numbers<[1], [0], [0], [1], [0, 0, 1, 1], [], []>} : vector<8x8xbf16>, vector<8x24xbf16>, vector<8x24xf32> -> vector<8x24xf32>
    %c0_84 = arith.constant 0 : index
    %c2 = arith.constant 2 : index
    %c0_85 = arith.constant 0 : index
    %c0_86 = arith.constant 0 : index
    %120 = vector.load %arg1[%c0_84, %c2, %c0_85, %c0_86] : memref<1x4x8x16xbf16, #tpu.memory_space<vmem>>, vector<1x1x8x16xbf16>
    %121 = vector.shape_cast %120 : vector<1x1x8x16xbf16> to vector<8x16xbf16>
    %c0_87 = arith.constant 0 : index
    %c2_88 = arith.constant 2 : index
    %c0_89 = arith.constant 0 : index
    %c0_90 = arith.constant 0 : index
    %122 = vector.load %arg2[%c0_87, %c2_88, %c0_89, %c0_90] : memref<1x4x8x16xbf16, #tpu.memory_space<vmem>>, vector<1x1x8x16xbf16>
    %123 = vector.shape_cast %122 : vector<1x1x8x16xbf16> to vector<8x16xbf16>
    %c0_91 = arith.constant 0 : index
    %c2_92 = arith.constant 2 : index
    %c0_93 = arith.constant 0 : index
    %c0_94 = arith.constant 0 : index
    %124 = vector.load %arg3[%c0_91, %c2_92, %c0_93, %c0_94] : memref<1x4x8x16xbf16, #tpu.memory_space<vmem>>, vector<1x1x8x16xbf16>
    %125 = vector.shape_cast %124 : vector<1x1x8x16xbf16> to vector<8x16xbf16>
    %c0_95 = arith.constant 0 : index
    %c2_96 = arith.constant 2 : index
    %c0_97 = arith.constant 0 : index
    %c0_98 = arith.constant 0 : index
    %126 = vector.load %arg4[%c0_95, %c2_96, %c0_97, %c0_98] : memref<1x4x8x12xbf16, #tpu.memory_space<vmem>>, vector<1x1x8x12xbf16>
    %127 = vector.shape_cast %126 : vector<1x1x8x12xbf16> to vector<8x12xbf16>
    %c0_99 = arith.constant 0 : index
    %c2_100 = arith.constant 2 : index
    %c0_101 = arith.constant 0 : index
    %c0_102 = arith.constant 0 : index
    %128 = vector.load %arg5[%c0_99, %c2_100, %c0_101, %c0_102] : memref<1x4x8x12xbf16, #tpu.memory_space<vmem>>, vector<1x1x8x12xbf16>
    %129 = vector.shape_cast %128 : vector<1x1x8x12xbf16> to vector<8x12xbf16>
    %c0_103 = arith.constant 0 : index
    %c2_104 = arith.constant 2 : index
    %c0_105 = arith.constant 0 : index
    %c0_106 = arith.constant 0 : index
    %130 = vector.load %arg6[%c0_103, %c2_104, %c0_105, %c0_106] : memref<1x4x8x24xbf16, #tpu.memory_space<vmem>>, vector<1x1x8x24xbf16>
    %131 = vector.shape_cast %130 : vector<1x1x8x24xbf16> to vector<8x24xbf16>
    %cst_107 = arith.constant dense<0.000000e+00> : vector<8x8xf32>
    %132 = tpu.matmul %121, %123, %cst_107 {dimension_numbers = #tpu.dot_dimension_numbers<[1], [1], [0], [0], [0, 0, 1, 0], [], []>} : vector<8x16xbf16>, vector<8x16xbf16>, vector<8x8xf32> -> vector<8x8xf32>
    %cst_108 = arith.constant 0.144337565 : f32
    %133 = vector.broadcast %cst_108 : f32 to vector<8x8xf32>
    %134 = arith.mulf %132, %133 : vector<8x8xf32>
    %135 = vector.extract_strided_slice %9 {offsets = [0, 0, 2], sizes = [8, 8, 1], strides = [1, 1, 1]} : vector<8x8x4xf32> to vector<8x8x1xf32>
    %136 = vector.shape_cast %135 : vector<8x8x1xf32> to vector<8x8xf32>
    %137 = arith.addf %134, %136 : vector<8x8xf32>
    %138 = arith.extf %127 : vector<8x12xbf16> to vector<8x12xf32>
    %139 = arith.extf %129 : vector<8x12xbf16> to vector<8x12xf32>
    %140 = arith.mulf %138, %138 : vector<8x12xf32>
    %cst_109 = arith.constant dense<0.000000e+00> : vector<8xf32>
    %141 = vector.multi_reduction <add>, %140, %cst_109 [1] : vector<8x12xf32> to vector<8xf32>
    %142 = vector.shape_cast %141 : vector<8xf32> to vector<8x1xf32>
    %143 = arith.mulf %139, %139 : vector<8x12xf32>
    %cst_110 = arith.constant dense<0.000000e+00> : vector<8xf32>
    %144 = vector.multi_reduction <add>, %143, %cst_110 [1] : vector<8x12xf32> to vector<8xf32>
    %145 = vector.shape_cast %144 : vector<8xf32> to vector<8x1xf32>
    %146 = tpu.transpose %145, [1, 0] : vector<8x1xf32> -> vector<1x8xf32>
    %147 = vector.broadcast %142 : vector<8x1xf32> to vector<8x8xf32>
    %148 = vector.broadcast %146 : vector<1x8xf32> to vector<8x8xf32>
    %149 = arith.addf %147, %148 : vector<8x8xf32>
    %cst_111 = arith.constant dense<0.000000e+00> : vector<8x8xf32>
    %150 = tpu.matmul %127, %129, %cst_111 {dimension_numbers = #tpu.dot_dimension_numbers<[1], [1], [0], [0], [0, 0, 1, 0], [], []>} : vector<8x12xbf16>, vector<8x12xbf16>, vector<8x8xf32> -> vector<8x8xf32>
    %cst_112 = arith.constant 2.000000e+00 : f32
    %151 = vector.broadcast %cst_112 : f32 to vector<8x8xf32>
    %152 = arith.mulf %151, %150 : vector<8x8xf32>
    %153 = arith.subf %149, %152 : vector<8x8xf32>
    %c2_113 = arith.constant 2 : index
    %154 = memref.load %arg10[%c2_113] : memref<4xf32, #tpu.memory_space<smem>>
    %155 = vector.broadcast %154 : f32 to vector<8x8xf32>
    %156 = arith.mulf %155, %153 : vector<8x8xf32>
    %157 = arith.subf %137, %156 : vector<8x8xf32>
    %158 = vector.broadcast %3 : vector<1x8xf32> to vector<8x8xf32>
    %159 = arith.addf %157, %158 : vector<8x8xf32>
    %cst_114 = arith.constant dense<0xFF800000> : vector<8xf32>
    %160 = vector.multi_reduction <maximumf>, %159, %cst_114 [1] : vector<8x8xf32> to vector<8xf32>
    %161 = vector.shape_cast %160 : vector<8xf32> to vector<8x1xf32>
    %162 = vector.broadcast %161 : vector<8x1xf32> to vector<8x8xf32>
    %163 = arith.subf %159, %162 : vector<8x8xf32>
    %164 = math.exp %163 : vector<8x8xf32>
    %cst_115 = arith.constant dense<0.000000e+00> : vector<8xf32>
    %165 = vector.multi_reduction <add>, %164, %cst_115 [1] : vector<8x8xf32> to vector<8xf32>
    %166 = vector.shape_cast %165 : vector<8xf32> to vector<8x1xf32>
    %167 = tpu.reciprocal %166 {approx = true} : vector<8x1xf32> -> vector<8x1xf32>
    %168 = vector.broadcast %167 : vector<8x1xf32> to vector<8x8xf32>
    %169 = arith.mulf %164, %168 : vector<8x8xf32>
    %170 = vector.shape_cast %169 : vector<8x8xf32> to vector<8x1x8xf32>
    %c0_116 = arith.constant 0 : index
    %c2_117 = arith.constant 2 : index
    %c0_118 = arith.constant 0 : index
    %171 = vector.load %arg12[%c0_116, %c2_117, %c0_118] : memref<8x4x8xf32, #tpu.memory_space<vmem>>, vector<8x1x8xf32>
    tpu.vector_store %arg12[%c0_116, %c2_117, %c0_118], %170 {strides = array<i32>} : memref<8x4x8xf32, #tpu.memory_space<vmem>>, vector<8x1x8xf32>,
    %172 = arith.truncf %169 : vector<8x8xf32> to vector<8x8xbf16>
    %cst_119 = arith.constant dense<0.000000e+00> : vector<8x16xf32>
    %173 = tpu.matmul %172, %125, %cst_119 {dimension_numbers = #tpu.dot_dimension_numbers<[1], [0], [0], [1], [0, 0, 1, 1], [], []>} : vector<8x8xbf16>, vector<8x16xbf16>, vector<8x16xf32> -> vector<8x16xf32>
    %cst_120 = arith.constant dense<0.000000e+00> : vector<8x24xf32>
    %174 = tpu.matmul %172, %131, %cst_120 {dimension_numbers = #tpu.dot_dimension_numbers<[1], [0], [0], [1], [0, 0, 1, 1], [], []>} : vector<8x8xbf16>, vector<8x24xbf16>, vector<8x24xf32> -> vector<8x24xf32>
    %c0_121 = arith.constant 0 : index
    %c3 = arith.constant 3 : index
    %c0_122 = arith.constant 0 : index
    %c0_123 = arith.constant 0 : index
    %175 = vector.load %arg1[%c0_121, %c3, %c0_122, %c0_123] : memref<1x4x8x16xbf16, #tpu.memory_space<vmem>>, vector<1x1x8x16xbf16>
    %176 = vector.shape_cast %175 : vector<1x1x8x16xbf16> to vector<8x16xbf16>
    %c0_124 = arith.constant 0 : index
    %c3_125 = arith.constant 3 : index
    %c0_126 = arith.constant 0 : index
    %c0_127 = arith.constant 0 : index
    %177 = vector.load %arg2[%c0_124, %c3_125, %c0_126, %c0_127] : memref<1x4x8x16xbf16, #tpu.memory_space<vmem>>, vector<1x1x8x16xbf16>
    %178 = vector.shape_cast %177 : vector<1x1x8x16xbf16> to vector<8x16xbf16>
    %c0_128 = arith.constant 0 : index
    %c3_129 = arith.constant 3 : index
    %c0_130 = arith.constant 0 : index
    %c0_131 = arith.constant 0 : index
    %179 = vector.load %arg3[%c0_128, %c3_129, %c0_130, %c0_131] : memref<1x4x8x16xbf16, #tpu.memory_space<vmem>>, vector<1x1x8x16xbf16>
    %180 = vector.shape_cast %179 : vector<1x1x8x16xbf16> to vector<8x16xbf16>
    %c0_132 = arith.constant 0 : index
    %c3_133 = arith.constant 3 : index
    %c0_134 = arith.constant 0 : index
    %c0_135 = arith.constant 0 : index
    %181 = vector.load %arg4[%c0_132, %c3_133, %c0_134, %c0_135] : memref<1x4x8x12xbf16, #tpu.memory_space<vmem>>, vector<1x1x8x12xbf16>
    %182 = vector.shape_cast %181 : vector<1x1x8x12xbf16> to vector<8x12xbf16>
    %c0_136 = arith.constant 0 : index
    %c3_137 = arith.constant 3 : index
    %c0_138 = arith.constant 0 : index
    %c0_139 = arith.constant 0 : index
    %183 = vector.load %arg5[%c0_136, %c3_137, %c0_138, %c0_139] : memref<1x4x8x12xbf16, #tpu.memory_space<vmem>>, vector<1x1x8x12xbf16>
    %184 = vector.shape_cast %183 : vector<1x1x8x12xbf16> to vector<8x12xbf16>
    %c0_140 = arith.constant 0 : index
    %c3_141 = arith.constant 3 : index
    %c0_142 = arith.constant 0 : index
    %c0_143 = arith.constant 0 : index
    %185 = vector.load %arg6[%c0_140, %c3_141, %c0_142, %c0_143] : memref<1x4x8x24xbf16, #tpu.memory_space<vmem>>, vector<1x1x8x24xbf16>
    %186 = vector.shape_cast %185 : vector<1x1x8x24xbf16> to vector<8x24xbf16>
    %cst_144 = arith.constant dense<0.000000e+00> : vector<8x8xf32>
    %187 = tpu.matmul %176, %178, %cst_144 {dimension_numbers = #tpu.dot_dimension_numbers<[1], [1], [0], [0], [0, 0, 1, 0], [], []>} : vector<8x16xbf16>, vector<8x16xbf16>, vector<8x8xf32> -> vector<8x8xf32>
    %cst_145 = arith.constant 0.144337565 : f32
    %188 = vector.broadcast %cst_145 : f32 to vector<8x8xf32>
    %189 = arith.mulf %187, %188 : vector<8x8xf32>
    %190 = vector.extract_strided_slice %9 {offsets = [0, 0, 3], sizes = [8, 8, 1], strides = [1, 1, 1]} : vector<8x8x4xf32> to vector<8x8x1xf32>
    %191 = vector.shape_cast %190 : vector<8x8x1xf32> to vector<8x8xf32>
    %192 = arith.addf %189, %191 : vector<8x8xf32>
    %193 = arith.extf %182 : vector<8x12xbf16> to vector<8x12xf32>
    %194 = arith.extf %184 : vector<8x12xbf16> to vector<8x12xf32>
    %195 = arith.mulf %193, %193 : vector<8x12xf32>
    %cst_146 = arith.constant dense<0.000000e+00> : vector<8xf32>
    %196 = vector.multi_reduction <add>, %195, %cst_146 [1] : vector<8x12xf32> to vector<8xf32>
    %197 = vector.shape_cast %196 : vector<8xf32> to vector<8x1xf32>
    %198 = arith.mulf %194, %194 : vector<8x12xf32>
    %cst_147 = arith.constant dense<0.000000e+00> : vector<8xf32>
    %199 = vector.multi_reduction <add>, %198, %cst_147 [1] : vector<8x12xf32> to vector<8xf32>
    %200 = vector.shape_cast %199 : vector<8xf32> to vector<8x1xf32>
    %201 = tpu.transpose %200, [1, 0] : vector<8x1xf32> -> vector<1x8xf32>
    %202 = vector.broadcast %197 : vector<8x1xf32> to vector<8x8xf32>
    %203 = vector.broadcast %201 : vector<1x8xf32> to vector<8x8xf32>
    %204 = arith.addf %202, %203 : vector<8x8xf32>
    %cst_148 = arith.constant dense<0.000000e+00> : vector<8x8xf32>
    %205 = tpu.matmul %182, %184, %cst_148 {dimension_numbers = #tpu.dot_dimension_numbers<[1], [1], [0], [0], [0, 0, 1, 0], [], []>} : vector<8x12xbf16>, vector<8x12xbf16>, vector<8x8xf32> -> vector<8x8xf32>
    %cst_149 = arith.constant 2.000000e+00 : f32
    %206 = vector.broadcast %cst_149 : f32 to vector<8x8xf32>
    %207 = arith.mulf %206, %205 : vector<8x8xf32>
    %208 = arith.subf %204, %207 : vector<8x8xf32>
    %c3_150 = arith.constant 3 : index
    %209 = memref.load %arg10[%c3_150] : memref<4xf32, #tpu.memory_space<smem>>
    %210 = vector.broadcast %209 : f32 to vector<8x8xf32>
    %211 = arith.mulf %210, %208 : vector<8x8xf32>
    %212 = arith.subf %192, %211 : vector<8x8xf32>
    %213 = vector.broadcast %3 : vector<1x8xf32> to vector<8x8xf32>
    %214 = arith.addf %212, %213 : vector<8x8xf32>
    %cst_151 = arith.constant dense<0xFF800000> : vector<8xf32>
    %215 = vector.multi_reduction <maximumf>, %214, %cst_151 [1] : vector<8x8xf32> to vector<8xf32>
    %216 = vector.shape_cast %215 : vector<8xf32> to vector<8x1xf32>
    %217 = vector.broadcast %216 : vector<8x1xf32> to vector<8x8xf32>
    %218 = arith.subf %214, %217 : vector<8x8xf32>
    %219 = math.exp %218 : vector<8x8xf32>
    %cst_152 = arith.constant dense<0.000000e+00> : vector<8xf32>
    %220 = vector.multi_reduction <add>, %219, %cst_152 [1] : vector<8x8xf32> to vector<8xf32>
    %221 = vector.shape_cast %220 : vector<8xf32> to vector<8x1xf32>
    %222 = tpu.reciprocal %221 {approx = true} : vector<8x1xf32> -> vector<8x1xf32>
    %223 = vector.broadcast %222 : vector<8x1xf32> to vector<8x8xf32>
    %224 = arith.mulf %219, %223 : vector<8x8xf32>
    %225 = vector.shape_cast %224 : vector<8x8xf32> to vector<8x1x8xf32>
    %c0_153 = arith.constant 0 : index
    %c3_154 = arith.constant 3 : index
    %c0_155 = arith.constant 0 : index
    %226 = vector.load %arg12[%c0_153, %c3_154, %c0_155] : memref<8x4x8xf32, #tpu.memory_space<vmem>>, vector<8x1x8xf32>
    tpu.vector_store %arg12[%c0_153, %c3_154, %c0_155], %225 {strides = array<i32>} : memref<8x4x8xf32, #tpu.memory_space<vmem>>, vector<8x1x8xf32>,
    %227 = arith.truncf %224 : vector<8x8xf32> to vector<8x8xbf16>
    %cst_156 = arith.constant dense<0.000000e+00> : vector<8x16xf32>
    %228 = tpu.matmul %227, %180, %cst_156 {dimension_numbers = #tpu.dot_dimension_numbers<[1], [0], [0], [1], [0, 0, 1, 1], [], []>} : vector<8x8xbf16>, vector<8x16xbf16>, vector<8x16xf32> -> vector<8x16xf32>
    %cst_157 = arith.constant dense<0.000000e+00> : vector<8x24xf32>
    %229 = tpu.matmul %227, %186, %cst_157 {dimension_numbers = #tpu.dot_dimension_numbers<[1], [0], [0], [1], [0, 0, 1, 1], [], []>} : vector<8x8xbf16>, vector<8x24xbf16>, vector<8x24xf32> -> vector<8x24xf32>
    %c0_158 = arith.constant 0 : index
    %c0_159 = arith.constant 0 : index
    %c0_160 = arith.constant 0 : index
    %230 = vector.load %arg12[%c0_158, %c0_159, %c0_160] : memref<8x4x8xf32, #tpu.memory_space<vmem>>, vector<8x4x8xf32>
    %231 = arith.truncf %230 : vector<8x4x8xf32> to vector<8x4x8xbf16>
    %cst_161 = arith.constant dense<0.000000e+00> : vector<8x4x8xf32>
    %232 = tpu.matmul %231, %1, %cst_161 {dimension_numbers = #tpu.dot_dimension_numbers<[2], [1], [1], [2], [0, 0, 0, 1, 1, 2], [0], [0]>} : vector<8x4x8xbf16>, vector<8x8x8xbf16>, vector<8x4x8xf32> -> vector<8x4x8xf32>
    %233 = tpu.concatenate %63, %118, %173, %228 in 1 : vector<8x16xf32>, vector<8x16xf32>, vector<8x16xf32>, vector<8x16xf32> -> vector<8x64xf32>
    %234 = tpu.concatenate %64, %119, %174, %229 in 1 : vector<8x24xf32>, vector<8x24xf32>, vector<8x24xf32>, vector<8x24xf32> -> vector<8x96xf32>
    %235 = vector.shape_cast %232 : vector<8x4x8xf32> to vector<8x32xf32>
    %cst_162 = arith.constant 0.000000e+00 : f32
    %236 = vector.broadcast %cst_162 : f32 to vector<8x64xf32>
    %237 = tpu.concatenate %233, %236 in 1 : vector<8x64xf32>, vector<8x64xf32> -> vector<8x128xf32>
    %c0_163 = arith.constant 0 : index
    %c0_164 = arith.constant 0 : index
    %c0_165 = arith.constant 0 : index
    %238 = vector.load %arg11[%c0_163, %c0_164, %c0_165] : memref<1x8x384xf32, #tpu.memory_space<vmem>>, vector<1x8x128xf32>
    %239 = vector.shape_cast %238 : vector<1x8x128xf32> to vector<8x128xf32>
    %240 = vector.shape_cast %237 : vector<8x128xf32> to vector<1x8x128xf32>
    tpu.vector_store %arg11[%c0_163, %c0_164, %c0_165], %240 {strides = array<i32>} : memref<1x8x384xf32, #tpu.memory_space<vmem>>, vector<1x8x128xf32>,
    %cst_166 = arith.constant 0.000000e+00 : f32
    %241 = vector.broadcast %cst_166 : f32 to vector<8x32xf32>
    %242 = tpu.concatenate %234, %241 in 1 : vector<8x96xf32>, vector<8x32xf32> -> vector<8x128xf32>
    %c0_167 = arith.constant 0 : index
    %c0_168 = arith.constant 0 : index
    %c128 = arith.constant 128 : index
    %243 = vector.load %arg11[%c0_167, %c0_168, %c128] : memref<1x8x384xf32, #tpu.memory_space<vmem>>, vector<1x8x128xf32>
    %244 = vector.shape_cast %243 : vector<1x8x128xf32> to vector<8x128xf32>
    %245 = vector.shape_cast %242 : vector<8x128xf32> to vector<1x8x128xf32>
    tpu.vector_store %arg11[%c0_167, %c0_168, %c128], %245 {strides = array<i32>} : memref<1x8x384xf32, #tpu.memory_space<vmem>>, vector<1x8x128xf32>,
    %cst_169 = arith.constant 0.000000e+00 : f32
    %246 = vector.broadcast %cst_169 : f32 to vector<8x96xf32>
    %247 = tpu.concatenate %235, %246 in 1 : vector<8x32xf32>, vector<8x96xf32> -> vector<8x128xf32>
    %c0_170 = arith.constant 0 : index
    %c0_171 = arith.constant 0 : index
    %c256 = arith.constant 256 : index
    %248 = vector.load %arg11[%c0_170, %c0_171, %c256] : memref<1x8x384xf32, #tpu.memory_space<vmem>>, vector<1x8x128xf32>
    %249 = vector.shape_cast %248 : vector<1x8x128xf32> to vector<8x128xf32>
    %250 = vector.shape_cast %247 : vector<8x128xf32> to vector<1x8x128xf32>
    tpu.vector_store %arg11[%c0_170, %c0_171, %c256], %250 {strides = array<i32>} : memref<1x8x384xf32, #tpu.memory_space<vmem>>, vector<1x8x128xf32>,
    return
  }
  func.func @transform_0(%arg0: i32) -> (i32, i32, i32, i32) {
    %c0_i32 = arith.constant 0 : i32
    %c0_i32_0 = arith.constant 0 : i32
    %c0_i32_1 = arith.constant 0 : i32
    %c0_i32_2 = arith.constant 0 : i32
    return %arg0, %c0_i32, %c0_i32_0, %c0_i32_1 : i32, i32, i32, i32
  }
  func.func @transform_1(%arg0: i32) -> (i32, i32, i32, i32) {
    %c0_i32 = arith.constant 0 : i32
    %c0_i32_0 = arith.constant 0 : i32
    %c0_i32_1 = arith.constant 0 : i32
    %c0_i32_2 = arith.constant 0 : i32
    return %arg0, %c0_i32, %c0_i32_0, %c0_i32_1 : i32, i32, i32, i32
  }
  func.func @transform_2(%arg0: i32) -> (i32, i32, i32, i32) {
    %c0_i32 = arith.constant 0 : i32
    %c0_i32_0 = arith.constant 0 : i32
    %c0_i32_1 = arith.constant 0 : i32
    %c0_i32_2 = arith.constant 0 : i32
    return %arg0, %c0_i32, %c0_i32_0, %c0_i32_1 : i32, i32, i32, i32
  }
  func.func @transform_3(%arg0: i32) -> (i32, i32, i32, i32) {
    %c0_i32 = arith.constant 0 : i32
    %c0_i32_0 = arith.constant 0 : i32
    %c0_i32_1 = arith.constant 0 : i32
    %c0_i32_2 = arith.constant 0 : i32
    return %arg0, %c0_i32, %c0_i32_0, %c0_i32_1 : i32, i32, i32, i32
  }
  func.func @transform_4(%arg0: i32) -> (i32, i32, i32, i32) {
    %c0_i32 = arith.constant 0 : i32
    %c0_i32_0 = arith.constant 0 : i32
    %c0_i32_1 = arith.constant 0 : i32
    %c0_i32_2 = arith.constant 0 : i32
    return %arg0, %c0_i32, %c0_i32_0, %c0_i32_1 : i32, i32, i32, i32
  }
  func.func @transform_5(%arg0: i32) -> (i32, i32, i32, i32) {
    %c0_i32 = arith.constant 0 : i32
    %c0_i32_0 = arith.constant 0 : i32
    %c0_i32_1 = arith.constant 0 : i32
    %c0_i32_2 = arith.constant 0 : i32
    return %arg0, %c0_i32, %c0_i32_0, %c0_i32_1 : i32, i32, i32, i32
  }
  func.func @transform_6(%arg0: i32) -> (i32, i32, i32, i32) {
    %c0_i32 = arith.constant 0 : i32
    %c0_i32_0 = arith.constant 0 : i32
    %c0_i32_1 = arith.constant 0 : i32
    %c0_i32_2 = arith.constant 0 : i32
    return %arg0, %c0_i32, %c0_i32_0, %c0_i32_1 : i32, i32, i32, i32
  }
  func.func @transform_7(%arg0: i32) -> (i32, i32, i32) {
    %c0_i32 = arith.constant 0 : i32
    %c0_i32_0 = arith.constant 0 : i32
    %c0_i32_1 = arith.constant 0 : i32
    return %arg0, %c0_i32, %c0_i32_0 : i32, i32, i32
  }
  func.func @transform_8(%arg0: i32) -> (i32, i32) {
    %c0_i32 = arith.constant 0 : i32
    %c0_i32_0 = arith.constant 0 : i32
    %c0_i32_1 = arith.constant 0 : i32
    return %c0_i32, %c0_i32_0 : i32, i32
  }
  func.func @transform_9(%arg0: i32) -> i32 {
    %c0_i32 = arith.constant 0 : i32
    %c0_i32_0 = arith.constant 0 : i32
    return %c0_i32 : i32
  }
  func.func @transform_10(%arg0: i32) -> (i32, i32, i32) {
    %c0_i32 = arith.constant 0 : i32
    %c0_i32_0 = arith.constant 0 : i32
    %c0_i32_1 = arith.constant 0 : i32
    return %arg0, %c0_i32, %c0_i32_0 : i32, i32, i32
  }
}

</mosaic_0001>

<bundles_post_ra>
// kernel: denoise_head_forward.3
= control target key start
LH: loop header
LB: loop body
LE: loop exit
PB: predicated region body
PF: predicated region fallthrough
CT: control target
= control target key end

     0   :  { %14 = vsyncpa [#allocation3], 0  ;;  %s711_s27 = smov 0   ;;  %s752_s0 = inlined_call_operand.vmem [shape: f32[2,2], index: 0, kind: input, shape index: {}]   ;;  %s753_s1 = inlined_call_operand.vmem [shape: f32[2,8,3], index: 1, kind: input, shape index: {}]   ;;  %s754_s2 = inlined_call_operand.vmem [shape: f32[2,8,3], index: 2, kind: input, shape index: {}]   ;;  %s755_s3 = inlined_call_operand.vmem [shape: f32[2,8,3], index: 3, kind: input, shape index: {}]   ;;  %s756_s4 = inlined_call_operand.vmem [shape: f32[2,8,3], index: 4, kind: input, shape index: {}]   ;;  %s757_s5 = inlined_call_operand.vmem [shape: f32[2,8,3], index: 5, kind: input, shape index: {}]   ;;  %s758_s6 = inlined_call_operand.vmem [shape: f32[2,8,3], index: 6, kind: output, shape index: {0}]   ;;  %s759_s7 = inlined_call_operand.vmem [shape: f32[2,8,3], index: 7, kind: output, shape index: {1}]   ;;  %s760_s8 = inlined_call_operand.vmem [shape: f32[2,8,3], index: 8, kind: output, shape index: {2}]  }
   0x1 LB: > { %s601_s28 = sadd.s32 4294967295, %s663_s27   ;;  %p603_p0 = scmp.ge.s32.totalorder %s663_s27, 1  ;;  %s663_s27 = sphi %s711_s27, %s20_s27  }
   0x2   : > { %p254_p1 = scmp.lt.s32.totalorder %s663_s27, 3  ;;  %s266_s9 = sshll.u32 %s752_s0, 4  ;;  %s267_s9 = int_to_ptr.vmem [resolvable:$true] %s266_s9 }
   0x3   : > { %p627_p3 = scmp.eq.s32.totalorder %s601_s28, 0  ;;  %s665_s10 = smov [#allocation2]  }
   0x4   : > { %p255_p2 = pnand %p603_p0, %p254_p1 }
   0x6   : > { %p623_p4 = pneg %p255_p2  ;;  %314 = sbr.rel (%p255_p2) target bundleno = 29 (0x1d), region = 44 }
   0x8   : > { %p624_p5 = pnand %p627_p3, %p623_p4 }
   0xa   : > { %626 = dma.vmem_to_smem (!%p624_p5), %s267_s9, 32, %s665_s10, [#allocation3]  }
   0xb   : > { %658 = dma.done.wait (%p627_p3), [#allocation3], 32  }
   0xc   : > { %660 = vsyncadd (%p627_p3), [#allocation3], 4294967264 }
   0xd   : > { %321 = sfence }
   0xe   : > { %p372_p6 = scmp.lt.s32.totalorder %s601_s28, 1  ;;  %s616_s11 = sshll.u32 %s601_s28, 7  ;;  %vm418_vm0 = vcmask 23552  }
   0xf   : > { %s405_s12 = sld [smem:[#allocation2 + %s616_s11]]  ;;  %s406_s13 = sadd.s32 1, %s616_s11 }
  0x10   : > { %s762_s28 = smov (!%p372_p6, %s601_s28), 1  ;;  %s407_s14 = sld [smem:[#allocation2 + %s406_s13]] }
  0x11   : > { %s608_s15 = sshll.u32 %s762_s28, 3 }
  0x12   : > { %s375_s18 = scalar_lea.vmem %s753_s1, %s608_s15  ;;  %s383_s21 = scalar_lea.vmem %s755_s3, %s608_s15 }
  0x13   : > { %s391_s24 = scalar_lea.vmem %s757_s5, %s608_s15  ;;  %v408_v0 = vld [vmem:[%s375_s18] sm:$0xff]  ;;  %s379_s29 = scalar_lea.vmem %s754_s2, %s608_s15 }
  0x14   : > { %v413_v2 = vld [vmem:[%s383_s21] sm:$0xff]  ;;  %s399_s9 = scalar_lea.vmem %s759_s7, %s608_s15  ;;  %s387_s13 = scalar_lea.vmem %s756_s4, %s608_s15 }
  0x15   : > { %v411_v1 = vstv %s405_s12  ;;  %v409_v3 = vld [vmem:[%s391_s24] sm:$0xff]  ;;  %s403_s17 = scalar_lea.vmem %s760_s8, %s608_s15  ;;  %s395_s20 = scalar_lea.vmem %s758_s6, %s608_s15 }
  0x16   : > { %v412_v4 = vmul.f32 %v411_v1, %v408_v0  ;;  %v420_v5 = vld [vmem:[%s379_s29] sm:$0xff]  ;;  %v414_v6 = vstv %s407_s14  ;;  %vm410_vm1 = vcmp.gt.f32.partialorder %v409_v3, 0.5 }
  0x17   : > { %v421_v7 = vmul.f32 %v420_v5, %v411_v1  ;;  %v423_v8 = vld [vmem:[%s387_s13] sm:$0xff]  ;;  %v415_v9 = vmul.f32 %v414_v6, %v413_v2 }
  0x18   : > { %v424_v10 = vmul.f32 %v423_v8, %v414_v6 }
  0x19   : > { %422 = vst.msk [vmem:[%s399_s9] sm:$0xff] %vm418_vm0, %v421_v7  ;;  %v416_v11 = vadd.f32 %v415_v9, %v412_v4 }
  0x1a   : > { %425 = vst.msk [vmem:[%s403_s17] sm:$0xff] %vm418_vm0, %v424_v10 }
  0x1b   : > { %v417_v12 = vsel %vm410_vm1, %v416_v11, %v408_v0 }
  0x1c   : > { %419 = vst.msk [vmem:[%s395_s20] sm:$0xff] %vm418_vm0, %v417_v12 }
  0x1d PF: > { %s20_s27 = sadd.s32 1, %s663_s27  }
  0x1e   : > { %p17_p7 = scmp.ge.s32.totalorder %s20_s27, 4  }
  0x20   :  { %19 = sbr.rel (!%p17_p7) target bundleno = 1 (0x1), region = 115 }
  0x25   :  { %473 = vsyncpa [#allocation3], 1 }
  0x26   :  { %475 = vsyncpa [#allocation3 + $0x1], 1 }

// kernel: denoise_head_forward.4
= control target key start
LH: loop header
LB: loop body
LE: loop exit
PB: predicated region body
PF: predicated region fallthrough
CT: control target
= control target key end

     0   :  { %15 = vsyncpa [#allocation4], 0  ;;  %s2149_s13 = smov 0   ;;  %s2544_s0 = inlined_call_operand.vmem [shape: bf16[2,4,8,16], index: 0, kind: input, shape index: {}]   ;;  %s2545_s1 = inlined_call_operand.vmem [shape: bf16[2,4,8,16], index: 1, kind: input, shape index: {}]   ;;  %s2546_s2 = inlined_call_operand.vmem [shape: bf16[2,4,8,16], index: 2, kind: input, shape index: {}]   ;;  %s2547_s3 = inlined_call_operand.vmem [shape: bf16[2,4,8,12], index: 3, kind: input, shape index: {}]   ;;  %s2548_s4 = inlined_call_operand.vmem [shape: bf16[2,4,8,12], index: 4, kind: input, shape index: {}]   ;;  %s2549_s5 = inlined_call_operand.vmem [shape: bf16[2,4,8,24], index: 5, kind: input, shape index: {}]   ;;  %s2550_s6 = inlined_call_operand.vmem [shape: bf16[2,8,8,8], index: 6, kind: input, shape index: {}]   ;;  %s2551_s7 = inlined_call_operand.vmem [shape: f32[2,1,8], index: 7, kind: input, shape index: {}]   ;;  %s2552_s8 = inlined_call_operand.vmem [shape: bf16[8,4], index: 8, kind: input, shape index: {}]   ;;  %s2553_s9 = inlined_call_operand.vmem [shape: f32[4], index: 9, kind: input, shape index: {}]   ;;  %s2554_s10 = inlined_call_operand.vmem [shape: f32[2,8,384], index: 10, kind: output, shape index: {}]  }
   0x1 LB: > { %s1892_s14 = sadd.s32 4294967295, %s2079_s13   ;;  %p1894_p0 = scmp.ge.s32.totalorder %s2079_s13, 1  ;;  %s2079_s13 = sphi %s2149_s13, %s21_s13  }
   0x2   : > { %p302_p1 = scmp.lt.s32.totalorder %s2079_s13, 3  ;;  %s317_s17 = sshll.u32 %s2553_s9, 4  ;;  %s318_s17 = int_to_ptr.vmem [resolvable:$true] %s317_s17 }
   0x3   : > { %p2001_p3 = scmp.eq.s32.totalorder %s1892_s14, 0  ;;  %s2081_s18 = smov [#allocation3]  }
   0x4   : > { %p303_p2 = pnand %p1894_p0, %p302_p1 }
   0x6   : > { %p1997_p4 = pneg %p303_p2  ;;  %392 = sbr.rel (%p303_p2) target bundleno = 1440 (0x5a0), region = 60 }
   0x8   : > { %p1998_p5 = pnand %p2001_p3, %p1997_p4 }
   0xa   : > { %2000 = dma.vmem_to_smem (!%p1998_p5), %s318_s17, 16, %s2081_s18, [#allocation4]  }
   0xb   : > { %2074 = dma.done.wait (%p2001_p3), [#allocation4], 16  }
   0xc   : > { %2076 = vsyncadd (%p2001_p3), [#allocation4], 4294967280 }
   0xd   : > { %399 = sfence }
   0xe   : > { %v518_v0 = vld [vmem:[%s2552_s8] sm:$0xf]  ;;  %vm552_vm0 = vcmask 1043456   ;;  %p465_p6 = scmp.lt.s32.totalorder %s1892_s14, 1  ;;  %vm539_vm1 = vcmask 64512   ;;  %vm681_vm2 = vcmask 97280   ;;  %v652_v47 = vlaneseq }
   0xf   : > { %v554_v1 = vsel %vm552_vm0, %v518_v0, 0  ;;  %v2082_v18 = vmov 1   ;;  %v2083_v19 = vmov 0   ;;  %vm599_vm3 = vcmask 130048   ;;  %s744_s24 = sld [smem:[#allocation3]]  ;;  %s2089_s20 = smov 48  }
  0x10   : > { %563 = vmatpush.bf16.msra.mxu0 %v554_v1  ;;  %s2556_s14 = smov (!%p465_p6, %s1892_s14), 1  ;;  %2026 = vset.pattern.permute.xlu2 %v2082_v18  ;;  %v2264_v48 = vand.u32 127, %v652_v47  ;;  %vm662_vm4 = vcmask 1041409   ;;  %v2084_v0 = vmov 2   ;;  %vm664_vm5 = vcmask 1042434  }
  0x11   : > { %s1987_s21 = sshll.u32 %s2556_s14, 5  ;;  %s2168_s22 = sshll.u32 %s2556_s14, 4  ;;  %2025 = vset.pattern.permute.xlu0 %v2083_v19  ;;  %2027 = vset.pattern.permute.xlu1 %v2083_v19  ;;  %vm666_vm6 = vcmask 1043459   ;;  %vm668_vm7 = vcmask 1044484   ;;  %vm670_vm8 = vcmask 1045509   ;;  %vm672_vm9 = vcmask 1046534  }
  0x12   : > { %s2173_s25 = scalar_lea.vmem %s2550_s6, %s1987_s21  ;;  %s2179_s28 = scalar_lea.vmem %s2548_s4, %s2168_s22  ;;  %vm674_vm10 = vcmask 1047559   ;;  %v2085_v47 = vmov 3   ;;  %vm778_vm11 = vcmask 57344   ;;  %vm1665_vm12 = vcmask 1047556  }
  0x13   : > { %v1988_v2 = vld [vmem:[%s2173_s25] sm:$0xff]  ;;  %v1989_v7 = vld [vmem:[%s2173_s25 + $0x8] sm:$0xff]  ;;  %s2190_s11 = scalar_lea.vmem %s2547_s3, %s2168_s22  ;;  %v1990_v16 = vld [vmem:[%s2173_s25 + $0x10] sm:$0xff]  ;;  %s2213_s16 = scalar_lea.vmem %s2545_s1, %s2168_s22  ;;  %vm1643_vm13 = vcmask 261120   ;;  %vm1736_vm14 = vcmask 523264   ;;  %vm1645_vm15 = vcmask 392192  }
  0x14   : > { %1930 = vmatmul.msk.bf16.vlgmr.msra.gmra.mxu0 %vm539_vm1, %v1988_v2  ;;  %v597_v3 = vld [vmem:[%s2179_s28] sm:$0xf]  ;;  %v2195_v9 = vld [vmem:[%s2179_s28 + $0x4] sm:$0xf]  ;;  %v1991_v17 = vld [vmem:[%s2173_s25 + $0x18] sm:$0xff]  ;;  %s2225_s19 = scalar_lea.vmem %s2544_s0, %s2168_s22  ;;  %s502_s23 = scalar_lea.vmem %s2551_s7, %s2556_s14 }
  0x15   : > { %v679_v4 = vunpack.c.l.bf16 %v597_v3  ;;  %v596_v8 = vld [vmem:[%s2190_s11] sm:$0xf]  ;;  %v897_v11 = vunpack.c.l.bf16 %v2195_v9  ;;  %v727_v31 = vsel %vm681_vm2, %v597_v3, 0  ;;  %v1941_v41 = vld [vmem:[%s2190_s11 + $0x4] sm:$0xf]  ;;  %v944_v55 = vsel %vm681_vm2, %v2195_v9, 0  ;;  %s2353_s12 = scalar_lea.vmem %s2546_s2, %s2168_s22  ;;  %s2363_s18 = scalar_lea.vmem %s2549_s5, %s2168_s22 }
  0x16   : > { %v678_v10 = vunpack.c.l.bf16 %v596_v8  ;;  %v594_v23 = vld [vmem:[%s2213_s16] sm:$0xf]  ;;  %736 = vmatpush.bf16.xpose.msra.mxu2 %v727_v31  ;;  %v896_v42 = vunpack.c.l.bf16 %v1941_v41  ;;  %v1939_v50 = vld [vmem:[%s2213_s16 + $0x4] sm:$0xf]  ;;  %v2281_v63 = vld [vmem:[%s2179_s28 + $0xc] sm:$0xf] }
  0x17   : > { %v685_v5 = vmul.f32 %v679_v4, %v679_v4  ;;  %v902_v13 = vmul.f32 %v897_v11, %v897_v11  ;;  %v604_v25 = vsel %vm599_vm3, %v594_v23, 0  ;;  %v593_v27 = vld [vmem:[%s2225_s19] sm:$0xf]  ;;  %v839_v53 = vsel %vm599_vm3, %v1939_v50, 0  ;;  %v1938_v56 = vld [vmem:[%s2225_s19 + $0x4] sm:$0xf] }
  0x18   : > { %v680_v12 = vmul.f32 %v678_v10, %v678_v10  ;;  %613 = vmatpush.bf16.xpose.msra.mxu1 %v604_v25  ;;  %v898_v44 = vmul.f32 %v896_v42, %v896_v42  ;;  %v1323_v2 = vunpack.c.l.bf16 %v2281_v63  ;;  %s1957_s22 = sld [smem:[#allocation3 + $0x2]]  ;;  %s2090_s21 = smov 72  }
  0x19   : > { %v686_v6 = vsel %vm681_vm2, %v685_v5, 0.0  ;;  %v903_v15 = vsel %vm681_vm2, %v902_v13, 0.0 }
  0x1a   : > { %687 = vadd.xlane.f32.xlu0 %v686_v6  ;;  %v682_v14 = vsel %vm681_vm2, %v680_v12, 0.0  ;;  %904 = vadd.xlane.f32.xlu1 %v903_v15  ;;  %v899_v45 = vsel %vm681_vm2, %v898_v44, 0.0  ;;  %v1328_v4 = vmul.f32 %v1323_v2, %v1323_v2  ;;  %v2306_v44 = vld [vmem:[%s502_s23] ss:$0 sm:$0xff]  ;;  %s2093_s23 = smov 8  }
  0x1b   : > { %683 = vadd.xlane.f32.xlu2 %v682_v14 }
  0x1c   : > { %v1329_v5 = vsel %vm681_vm2, %v1328_v4, 0.0 }
  0x1d   : > { %1935 = vmatmul.msk.bf16.vlgmr.msra.gmra.mxu2 %vm681_vm2, %v596_v8 }
  0x1e   : > { %953 = vmatpush.bf16.xpose.msrb.mxu2 %v944_v55 }
  0x1f   : > { %1934 = vmatmul.msk.bf16.vlgmr.msra.gmra.mxu1 %vm599_vm3, %v593_v27 }
  0x20   : > { %848 = vmatpush.bf16.xpose.msrb.mxu1 %v839_v53 }
  0x24   : > { %1931 = vmatmul.msk.bf16.gmra.mxu0 %vm539_vm1, %v1989_v7 }
  0x2d   : > { %1945 = vmatmul.msk.bf16.vlgmr.msrb.gmra.mxu2 %vm681_vm2, %v1941_v41 }
  0x2f   : > { %1944 = vmatmul.msk.bf16.vlgmr.msrb.gmra.mxu1 %vm599_vm3, %v1938_v56 }
  0x34   : > { %1932 = vmatmul.msk.bf16.gmra.mxu0 %vm539_vm1, %v1990_v16 }
  0x44   : > { %1933 = vmatmul.msk.bf16.gmra.mxu0 %vm539_vm1, %v1991_v17 }
  0x8d   : > { %v688_v34 = vpop.xlane.xlu0 %687  ;;  %v905_v57 = vpop.xlane.xlu1 %904 }
  0x8e   : > { %v2260_v43 = vpop.xlane.xlu2 %683 }
  0x91   : > { %v565_v20 = vpop.f32.mrf.mxu0 }
  0x92   : > { %v2205_v21 = vmul.f32 0.57735026, %v565_v20 }
  0x94   : > { %629 = vperm.xlu0 %2025, %v2205_v21   ;;  %856 = vperm.xlu2 %2026, %v2205_v21  }
  0x99   : > { %v567_v22 = vpop.f32.mrf.mxu0 }
  0x9a   : > { %v2216_v24 = vmul.f32 0.57735026, %v567_v22 }
  0x9c   : > { %632 = vperm.xlu1 %2027, %v2216_v24   ;;  %859 = vperm.xlu2 %2026, %v2216_v24   ;;  %v615_v58 = vpop.f32.mrf.mxu1 }
  0xa0   : > { %v738_v62 = vpop.f32.mrf.mxu2 }
  0xa1   : > { %v570_v26 = vpop.f32.mrf.mxu0  ;;  %v742_v27 = vmul.f32 2.0, %v738_v62 }
  0xa2   : > { %v2228_v28 = vmul.f32 0.57735026, %v570_v26 }
  0xa4   : > { %635 = vperm.xlu1 %2027, %v2228_v28   ;;  %2029 = vset.pattern.permute.xlu2 %v2083_v19  ;;  %v617_v59 = vpop.f32.mrf.mxu1 }
  0xa8   : > { %v740_v3 = vpop.f32.mrf.mxu2 }
  0xa9   : > { %v572_v29 = vpop.f32.mrf.mxu0 }
  0xaa   : > { %v2232_v30 = vmul.f32 0.57735026, %v572_v29 }
  0xac   : > { %638 = vperm.xlu2 %2029, %v2232_v30   ;;  %v850_v50 = vpop.f32.mrf.mxu1 }
  0xb0   : > { %v955_v56 = vpop.f32.mrf.mxu2 }
  0xb1   : > { %v575_v32 = vpop.f32.mrf.mxu0 }
  0xb2   : > { %v2236_v33 = vmul.f32 0.57735026, %v575_v32  ;;  %v619_v32 = vmul.f32 0.14433756, %v615_v58 }
  0xb4   : > { %641 = vperm.xlu2 %2029, %v2236_v33   ;;  %v852_v53 = vpop.f32.mrf.mxu1 }
  0xb6   : > { %689 = vxpose.xlu0.b32.start.end [1/1] (short) (narrow) %v688_v34, 8 }
  0xb9   : > { %v577_v35 = vpop.f32.mrf.mxu0 }
  0xba   : > { %v2240_v36 = vmul.f32 0.57735026, %v577_v35 }
  0xbc   : > { %644 = vperm.xlu1 %2027, %v2240_v36   ;;  %2031 = vset.pattern.permute.xlu2 %v2082_v18 }
  0xbd   : > { %868 = vperm.xlu2 %2031, %v2236_v33  }
  0xc1   : > { %v580_v37 = vpop.f32.mrf.mxu0 }
  0xc2   : > { %v2245_v38 = vmul.f32 0.57735026, %v580_v37  ;;  %v745_v37 = vstv %s744_s24  ;;  %s1992_s24 = smul.u32 24, %s2556_s14 }
  0xc4   : > { %647 = vperm.xlu1 %2027, %v2245_v38  }
  0xc5   : > { %871 = vperm.xlu2 %2031, %v2240_v36  }
  0xc9   : > { %v582_v39 = vpop.f32.mrf.mxu0 }
  0xca   : > { %v2249_v40 = vmul.f32 0.57735026, %v582_v39 }
  0xcc   : > { %650 = vperm.xlu1 %2027, %v2249_v40  }
  0xd4   : > { %2030 = vset.pattern.permute.xlu1 %v2082_v18 }
  0xd5   : > { %865 = vperm.xlu1 %2030, %v2232_v30  }
  0xdd   : > { %874 = vperm.xlu1 %2030, %v2245_v38  }
  0xe5   : > { %877 = vperm.xlu1 %2030, %v2249_v40  }
  0xed   : > { %2032 = vset.pattern.permute.xlu1 %v2084_v0 }
  0xee   : > { %900 = vadd.xlane.f32.xlu2 %v899_v45  ;;  %v857_v46 = vpop.permute.xlu2 %856 }
  0xef   : > { %v879_v51 = vperm.slane %v857_v46, %v2264_v48 }
  0xf6   : > { %v860_v49 = vpop.permute.xlu2 %859 }
  0xf7   : > { %v880_v52 = vperm.slane %v860_v49, %v2264_v48  ;;  %v2316_v49 = vld [vmem:[%s2179_s28 + $0x8] sm:$0xf]  ;;  %s1946_s28 = sld [smem:[#allocation3 + $0x1]] }
  0xf9   : > { %v2271_v54 = vsel %vm662_vm4, %v880_v52, %v879_v51  ;;  %v1110_v51 = vunpack.c.l.bf16 %v2316_v49 }
  0xfb   : > { %v1115_v52 = vmul.f32 %v1110_v51, %v1110_v51 }
  0xfd   : > { %v1116_v55 = vsel %vm681_vm2, %v1115_v52, 0.0 }
 0x106   : > { %v639_v6 = vpop.permute.xlu2 %638  ;;  %v630_v8 = vpop.permute.xlu0 %629 }
 0x107   : > { %v654_v11 = vperm.slane %v630_v8, %v2264_v48  ;;  %v657_v14 = vperm.slane %v639_v6, %v2264_v48 }
 0x10e   : > { %v633_v60 = vpop.permute.xlu1 %632  ;;  %v642_v15 = vpop.permute.xlu2 %641 }
 0x10f   : > { %v655_v9 = vperm.slane %v633_v60, %v2264_v48  ;;  %v658_v19 = vperm.slane %v642_v15, %v2264_v48 }
 0x111   : > { %v663_v12 = vsel %vm662_vm4, %v655_v9, %v654_v11  ;;  %v959_v9 = vmul.f32 2.0, %v955_v56 }
 0x116   : > { %v636_v61 = vpop.permute.xlu1 %635 }
 0x117   : > { %906 = vxpose.xlu2.b32.start.end [1/1] (short) (narrow) %v905_v57, 8  ;;  %v656_v10 = vperm.slane %v636_v61, %v2264_v48  ;;  %v957_v57 = vpop.f32.mrf.mxu2  ;;  %v869_v58 = vpop.permute.xlu2 %868 }
 0x119   : > { %v665_v13 = vsel %vm664_vm5, %v656_v10, %v663_v12 }
 0x11a   : > { %v667_v17 = vsel %vm666_vm6, %v657_v14, %v665_v13  ;;  %v962_v14 = vstv %s1946_s28  ;;  %s507_s28 = scalar_lea.vmem %s2554_s10, %s1992_s24 }
 0x11b   : > { %v669_v25 = vsel %vm668_vm7, %v658_v19, %v667_v17 }
 0x11d   : > { %2028 = vset.pattern.permute.xlu0 %v2082_v18 }
 0x11f   : > { %v872_v61 = vpop.permute.xlu2 %871 }
 0x124   : > { %862 = vperm.xlu0 %2028, %v2228_v28  }
 0x12c   : > { %2033 = vset.pattern.permute.xlu0 %v2084_v0 }
 0x12e   : > { %v645_v1 = vpop.permute.xlu1 %644 }
 0x12f   : > { %v659_v18 = vperm.slane %v645_v1, %v2264_v48 }
 0x131   : > { %v671_v29 = vsel %vm670_vm8, %v659_v18, %v669_v25 }
 0x136   : > { %v648_v7 = vpop.permute.xlu1 %647 }
 0x137   : > { %v660_v20 = vperm.slane %v648_v7, %v2264_v48 }
 0x139   : > { %v673_v31 = vsel %vm672_vm9, %v660_v20, %v671_v29 }
 0x13e   : > { %v651_v16 = vpop.permute.xlu1 %650 }
 0x13f   : > { %v661_v22 = vperm.slane %v651_v16, %v2264_v48 }
 0x141   : > { %v675_v35 = vsel %vm674_vm10, %v661_v22, %v673_v31 }
 0x142   : > { %v677_v41 = vadd.f32 %v675_v35, %v619_v32 }
 0x147   : > { %v866_v59 = vpop.permute.xlu1 %865 }
 0x148   : > { %v882_v1 = vperm.slane %v866_v59, %v2264_v48 }
 0x14e   : > { %1330 = vadd.xlane.f32.xlu0 %v1329_v5  ;;  %v884_v5 = vperm.slane %v872_v61, %v2264_v48 }
 0x14f   : > { %v875_v62 = vpop.permute.xlu1 %874 }
 0x150   : > { %v885_v6 = vperm.slane %v875_v62, %v2264_v48  ;;  %v1961_v62 = vld [vmem:[%s2213_s16 + $0xc] sm:$0xf] }
 0x157   : > { %v878_v7 = vpop.permute.xlu1 %877 }
 0x158   : > { %v886_v11 = vperm.slane %v878_v7, %v2264_v48 }
 0x15a   : > { %v705_v23 = vpop.trf.xlu0 }
 0x15b   : > { %v721_v26 = vperm.slane %v705_v23, 0 }
 0x15d   : > { %v722_v34 = vadd.f32 %v721_v26, %v2260_v43 }
 0x15f   : > { %v743_v39 = vsub.f32 %v722_v34, %v742_v27 }
 0x161   : > { %v746_v42 = vmul.f32 %v745_v37, %v743_v39  ;;  %v901_v2 = vpop.xlane.xlu2 %900  ;;  %v1950_v37 = vld [vmem:[%s2213_s16 + $0x8] sm:$0xf]  ;;  %s2086_s16 = smov 16  }
 0x162   : > { %1072 = vperm.xlu0 %2033, %v2216_v24   ;;  %v1052_v39 = vsel %vm599_vm3, %v1950_v37, 0 }
 0x163   : > { %v747_v45 = vsub.f32 %v677_v41, %v746_v42  ;;  %1061 = vmatpush.bf16.xpose.msra.mxu2 %v1052_v39 }
 0x165   : > { %v751_v46 = vadd.f32 %v2306_v44, %v747_v45  ;;  %v1949_v45 = vld [vmem:[%s2225_s19 + $0x8] sm:$0xf] }
 0x167   : > { %v752_v43 = vsel %vm539_vm1, %v751_v46, -inf }
 0x168   : > { %753 = vmax.xlane.f32.xlu1 %v752_v43 }
 0x16a   : > { %1075 = vperm.xlu0 %2033, %v2228_v28   ;;  %1955 = vmatmul.msk.bf16.vlgmr.msra.gmra.mxu2 %vm599_vm3, %v1949_v45 }
 0x172   : > { %1087 = vperm.xlu0 %2033, %v2245_v38  }
 0x179   : > { %2036 = vset.pattern.permute.xlu2 %v2085_v47 }
 0x17a   : > { %1090 = vperm.xlu0 %2033, %v2249_v40  }
 0x182   : > { %2035 = vset.pattern.permute.xlu0 %v2085_v47 }
 0x183   : > { %1285 = vperm.xlu0 %2035, %v2216_v24  }
 0x188   : > { %1117 = vadd.xlane.f32.xlu2 %v1116_v55 }
 0x18b   : > { %1291 = vperm.xlu0 %2035, %v2232_v30  }
 0x193   : > { %1297 = vperm.xlu0 %2035, %v2240_v36  }
 0x196   : > { %v863_v60 = vpop.permute.xlu0 %862 }
 0x197   : > { %v881_v24 = vperm.slane %v863_v60, %v2264_v48 }
 0x199   : > { %v888_v0 = vsel %vm664_vm5, %v881_v24, %v2271_v54 }
 0x19a   : > { %v889_v3 = vsel %vm666_vm6, %v882_v1, %v888_v0  ;;  %v1940_v0 = vld [vmem:[%s2353_s12 + $0x4] sm:$0xf]  ;;  %v1265_v1 = vsel %vm599_vm3, %v1961_v62, 0 }
 0x19b   : > { %1300 = vperm.xlu0 %2035, %v2245_v38   ;;  %v883_v38 = vperm.slane %v869_v58, %v2264_v48  ;;  %1274 = vmatpush.bf16.xpose.msrb.mxu0 %v1265_v1 }
 0x19d   : > { %v890_v4 = vsel %vm668_vm7, %v883_v38, %v889_v3  ;;  %v1952_v3 = vld [vmem:[%s2190_s11 + $0x8] sm:$0xf] }
 0x19e   : > { %v1109_v38 = vunpack.c.l.bf16 %v1952_v3 }
 0x1a0   : > { %1288 = vperm.xlu2 %2036, %v2228_v28   ;;  %v891_v28 = vsel %vm670_vm8, %v884_v5, %v890_v4  ;;  %v1111_v4 = vmul.f32 %v1109_v38, %v1109_v38  ;;  %v1960_v5 = vld [vmem:[%s2225_s19 + $0xc] sm:$0xf]  ;;  %s2087_s19 = smov 24  }
 0x1a1   : > { %v892_v8 = vsel %vm672_vm9, %v885_v6, %v891_v28  ;;  %v1943_v28 = vld [vmem:[%s2363_s18 + $0x4] sm:$0xf]  ;;  %v1157_v6 = vsel %vm681_vm2, %v2316_v49, 0 }
 0x1a2   : > { %v893_v13 = vsel %vm674_vm10, %v886_v11, %v892_v8  ;;  %1966 = vmatmul.msk.bf16.vlgmr.msrb.gmra.mxu0 %vm599_vm3, %v1960_v5 }
 0x1a8   : > { %1303 = vperm.xlu2 %2036, %v2249_v40   ;;  %v854_v40 = vmul.f32 0.14433756, %v850_v50  ;;  %v598_v50 = vld [vmem:[%s2363_s18] sm:$0xf] }
 0x1a9   : > { %v808_v51 = vsel %vm552_vm0, %v598_v50, 0 }
 0x1aa   : > { %v895_v16 = vadd.f32 %v893_v13, %v854_v40 }
 0x1b0   : > { %v922_v54 = vpop.trf.xlu2 }
 0x1b1   : > { %v938_v10 = vperm.slane %v922_v54, 0 }
 0x1b3   : > { %v939_v12 = vadd.f32 %v938_v10, %v901_v2  ;;  %v1005_v2 = vsel %vm552_vm0, %v1940_v0, 0 }
 0x1b5   : > { %v960_v15 = vsub.f32 %v939_v12, %v959_v9  ;;  %v1370_v9 = vsel %vm681_vm2, %v2281_v63, 0 }
 0x1b7   : > { %v963_v17 = vmul.f32 %v962_v14, %v960_v15  ;;  %v1963_v15 = vld [vmem:[%s2190_s11 + $0xc] sm:$0xf]  ;;  %s1968_s11 = sld [smem:[#allocation3 + $0x3]] }
 0x1b9   : > { %v964_v18 = vsub.f32 %v895_v16, %v963_v17  ;;  %v1322_v16 = vunpack.c.l.bf16 %v1963_v15 }
 0x1bb   : > { %v965_v19 = vadd.f32 %v2306_v44, %v964_v18  ;;  %v1324_v17 = vmul.f32 %v1322_v16, %v1322_v16 }
 0x1bd   : > { %v966_v20 = vsel %vm539_vm1, %v965_v19, -inf  ;;  %v1325_v18 = vsel %vm681_vm2, %v1324_v17, 0.0 }
 0x1be   : > { %967 = vmax.xlane.f32.xlu1 %v966_v20 }
 0x1c1   : > { %v1331_v22 = vpop.xlane.xlu0 %1330 }
 0x1ce   : > { %1332 = vxpose.xlu2.b32.start.end [1/1] (short) (narrow) %v1331_v22, 8 }
 0x1db   : > { %v754_v23 = vpop.xlane.xlu1 %753 }
 0x1dc   : > { %v755_v25 = vsub.f32 %v751_v46, %v754_v23  ;;  %v595_v46 = vld [vmem:[%s2353_s12] sm:$0xf]  ;;  %v1073_v23 = vpop.permute.xlu0 %1072 }
 0x1dd   : > { %v792_v43 = vsel %vm552_vm0, %v595_v46, 0 }
 0x1de   : > { %v756_v26 = vmul.f32 1.442695, %v755_v25  ;;  %801 = vmatpush.bf16.msra.mxu3 %v792_v43 }
 0x1e0   : > { %2038 = vpow2.f32 %v756_v26 }
 0x1e2   : > { %817 = vmatpush.bf16.msrb.mxu3 %v808_v51 }
 0x1e4   : > { %v1076_v26 = vpop.permute.xlu0 %1075 }
 0x1e6   : > { %v2039_v27 = vpop.eup %2038 }
 0x1e7   : > { %v758_v29 = vsel %vm539_vm1, %v2039_v27, 0.0 }
 0x1e8   : > { %759 = vadd.xlane.f32.xlu1 %v758_v29 }
 0x1ed   : > { %v1063_v13 = vpop.f32.mrf.mxu2 }
 0x1f5   : > { %v1065_v14 = vpop.f32.mrf.mxu2 }
 0x1fb   : > { %v1118_v31 = vpop.xlane.xlu2 %1117 }
 0x1fc   : > { %1119 = vxpose.xlu0.b32.start.end [1/1] (short) (narrow) %v1118_v31, 8 }
 0x21f   : > { %v2417_v29 = vpop.f32.mrf.mxu0 }
 0x227   : > { %v1278_v31 = vpop.f32.mrf.mxu0 }
 0x231   : > { %v968_v32 = vpop.xlane.xlu1 %967 }
 0x232   : > { %v969_v34 = vsub.f32 %v965_v19, %v968_v32 }
 0x234   : > { %v970_v35 = vmul.f32 1.442695, %v969_v34 }
 0x236   : > { %2040 = vpow2.f32 %v970_v35 }
 0x23c   : > { %v2345_v41 = vpop.eup %2040 }
 0x23d   : > { %v972_v42 = vsel %vm539_vm1, %v2345_v41, 0.0 }
 0x23e   : > { %973 = vadd.xlane.f32.xlu1 %v972_v42 }
 0x257   : > { %1069 = vperm.xlu1 %2032, %v2205_v21  }
 0x25b   : > { %v760_v52 = vpop.xlane.xlu1 %759 }
 0x25c   : > { %2042 = vrcp.f32 %v760_v52 }
 0x25f   : > { %1078 = vperm.xlu1 %2032, %v2232_v30  }
 0x262   : > { %v2043_v53 = vpop.eup %2042 }
 0x263   : > { %v762_v55 = vmul.f32 %v2043_v53, %v2039_v27  ;;  %v1088_v27 = vpop.permute.xlu0 %1087 }
 0x264   : > { %v1098_v38 = vperm.slane %v1088_v27, %v2264_v48 }
 0x265   : > { %v787_v56 = vpack.c.bf16 %v762_v55, %v762_v55  ;;  %779 = vst.msk [vmem:[#allocation2] sm:$0x1] %vm778_vm11, %v762_v55  ;;  %v764_v57 = vrot.slane %v762_v55, 1  ;;  %v765_v58 = vrot.slane %v762_v55, 2  ;;  %v766_v59 = vrot.slane %v762_v55, 3 }
 0x266   : > { %v767_v60 = vrot.slane %v762_v55, 4  ;;  %v768_v61 = vrot.slane %v762_v55, 5  ;;  %v769_v30 = vrot.slane %v762_v55, 6  ;;  %v770_v24 = vrot.slane %v762_v55, 7 }
 0x267   : > { %1081 = vperm.xlu1 %2032, %v2236_v33   ;;  %1936 = vmatmul.msk.bf16.vlgmr.msra.gmra.mxu3 %vm539_vm1, %v787_v56  ;;  %780 = vst.msk [vmem:[#allocation2 + $0x4] sm:$0x1] %vm778_vm11, %v764_v57  ;;  %v1093_v55 = vperm.slane %v1073_v23, %v2264_v48 }
 0x268   : > { %781 = vst.msk [vmem:[#allocation2 + $0x8] sm:$0x1] %vm778_vm11, %v765_v58  ;;  %1014 = vmatpush.bf16.msra.mxu3 %v1005_v2 }
 0x269   : > { %782 = vst.msk [vmem:[#allocation2 + $0xc] sm:$0x1] %vm778_vm11, %v766_v59  ;;  %v1094_v59 = vperm.slane %v1076_v26, %v2264_v48 }
 0x26a   : > { %783 = vst.msk [vmem:[#allocation2 + $0x10] sm:$0x1] %vm778_vm11, %v767_v60 }
 0x26b   : > { %784 = vst.msk [vmem:[#allocation2 + $0x14] sm:$0x1] %vm778_vm11, %v768_v61  ;;  %v1091_v32 = vpop.permute.xlu0 %1090 }
 0x26c   : > { %785 = vst.msk [vmem:[#allocation2 + $0x18] sm:$0x1] %vm778_vm11, %v769_v30 }
 0x26d   : > { %786 = vst.msk [vmem:[#allocation2 + $0x1c] sm:$0x1] %vm778_vm11, %v770_v24 }
 0x26f   : > { %1084 = vperm.xlu1 %2032, %v2240_v36   ;;  %v1112_v36 = vsel %vm681_vm2, %v1111_v4, 0.0 }
 0x273   : > { %v1286_v35 = vpop.permute.xlu0 %1285 }
 0x277   : > { %1937 = vmatmul.msk.bf16.vlgmr.msrb.gmra.mxu3 %vm539_vm1, %v787_v56  ;;  %2034 = vset.pattern.permute.xlu1 %v2085_v47  ;;  %v1021_v47 = vsel %vm552_vm0, %v1943_v28, 0  ;;  %v1289_v56 = vpop.permute.xlu2 %1288  ;;  %v1099_v28 = vperm.slane %v1091_v32, %v2264_v48 }
 0x278   : > { %1030 = vmatpush.bf16.msra.mxu1 %v1021_v47  ;;  %1166 = vmatpush.bf16.xpose.msrb.mxu3 %v1157_v6  ;;  %v1306_v47 = vperm.slane %v1286_v35, %v2264_v48 }
 0x27b   : > { %v1292_v39 = vpop.permute.xlu0 %1291 }
 0x27c   : > { %v1308_v16 = vperm.slane %v1292_v39, %v2264_v48 }
 0x27f   : > { %v1304_v6 = vpop.permute.xlu2 %1303 }
 0x283   : > { %v1298_v42 = vpop.permute.xlu0 %1297 }
 0x284   : > { %v1310_v26 = vperm.slane %v1298_v42, %v2264_v48 }
 0x28b   : > { %v1301_v51 = vpop.permute.xlu0 %1300 }
 0x28c   : > { %v1311_v35 = vperm.slane %v1301_v51, %v2264_v48 }
 0x299   : > { %1113 = vadd.xlane.f32.xlu1 %v1112_v36 }
 0x2a0   : > { %v1135_v1 = vpop.trf.xlu0 }
 0x2a1   : > { %v1151_v4 = vperm.slane %v1135_v1, 0 }
 0x2b1   : > { %v974_v7 = vpop.xlane.xlu1 %973 }
 0x2b2   : > { %2044 = vrcp.f32 %v974_v7  ;;  %1282 = vperm.xlu1 %2034, %v2205_v21  }
 0x2b8   : > { %v2045_v54 = vpop.eup %2044 }
 0x2b9   : > { %v976_v8 = vmul.f32 %v2045_v54, %v2345_v41  ;;  %v1067_v54 = vmul.f32 0.14433756, %v1063_v13 }
 0x2ba   : > { %1294 = vperm.xlu1 %2034, %v2236_v33  }
 0x2bb   : > { %v1000_v10 = vpack.c.bf16 %v976_v8, %v976_v8  ;;  %992 = vst.msk [vmem:[#allocation2 + $0x1] sm:$0x1] %vm778_vm11, %v976_v8  ;;  %v978_v11 = vrot.slane %v976_v8, 1  ;;  %v979_v40 = vrot.slane %v976_v8, 2  ;;  %v980_v12 = vrot.slane %v976_v8, 3 }
 0x2bc   : > { %v981_v49 = vrot.slane %v976_v8, 4  ;;  %v982_v21 = vrot.slane %v976_v8, 5  ;;  %v983_v33 = vrot.slane %v976_v8, 6  ;;  %v984_v63 = vrot.slane %v976_v8, 7 }
 0x2bd   : > { %1947 = vmatmul.msk.bf16.vlgmr.msra.gmra.mxu3 %vm539_vm1, %v1000_v10  ;;  %1948 = vmatmul.msk.bf16.vlgmr.msra.gmra.mxu1 %vm539_vm1, %v1000_v10  ;;  %993 = vst.msk [vmem:[#allocation2 + $0x5] sm:$0x1] %vm778_vm11, %v978_v11 }
 0x2be   : > { %1379 = vmatpush.bf16.xpose.msra.mxu3 %v1370_v9  ;;  %994 = vst.msk [vmem:[#allocation2 + $0x9] sm:$0x1] %vm778_vm11, %v979_v40 }
 0x2bf   : > { %995 = vst.msk [vmem:[#allocation2 + $0xd] sm:$0x1] %vm778_vm11, %v980_v12  ;;  %v1175_v12 = vstv %s1957_s22 }
 0x2c0   : > { %996 = vst.msk [vmem:[#allocation2 + $0x11] sm:$0x1] %vm778_vm11, %v981_v49  ;;  %v1307_v49 = vperm.slane %v1289_v56, %v2264_v48 }
 0x2c1   : > { %997 = vst.msk [vmem:[#allocation2 + $0x15] sm:$0x1] %vm778_vm11, %v982_v21 }
 0x2c2   : > { %998 = vst.msk [vmem:[#allocation2 + $0x19] sm:$0x1] %vm778_vm11, %v983_v33 }
 0x2c3   : > { %999 = vst.msk [vmem:[#allocation2 + $0x1d] sm:$0x1] %vm778_vm11, %v984_v63 }
 0x2c9   : > { %v1070_v34 = vpop.permute.xlu1 %1069 }
 0x2ca   : > { %v1092_v52 = vperm.slane %v1070_v34, %v2264_v48 }
 0x2cc   : > { %v1100_v57 = vsel %vm662_vm4, %v1093_v55, %v1092_v52 }
 0x2cd   : > { %1956 = vmatmul.msk.bf16.vlgmr.msrb.gmra.mxu3 %vm681_vm2, %v1952_v3  ;;  %v1101_v62 = vsel %vm664_vm5, %v1094_v59, %v1100_v57 }
 0x2d1   : > { %v1079_v37 = vpop.permute.xlu1 %1078 }
 0x2d2   : > { %v1095_v58 = vperm.slane %v1079_v37, %v2264_v48 }
 0x2d4   : > { %v1102_v0 = vsel %vm666_vm6, %v1095_v58, %v1101_v62  ;;  %v1954_v62 = vld [vmem:[%s2363_s18 + $0x8] sm:$0xf] }
 0x2d9   : > { %v1082_v41 = vpop.permute.xlu1 %1081 }
 0x2da   : > { %v1096_v60 = vperm.slane %v1082_v41, %v2264_v48  ;;  %v1312_v41 = vperm.slane %v1304_v6, %v2264_v48 }
 0x2dc   : > { %v1103_v2 = vsel %vm668_vm7, %v1096_v60, %v1102_v0  ;;  %v1234_v0 = vsel %vm552_vm0, %v1954_v62, 0 }
 0x2dd   : > { %1967 = vmatmul.msk.bf16.vlgmr.msra.gmra.mxu3 %vm681_vm2, %v1963_v15  ;;  %1243 = vmatpush.bf16.msrb.mxu2 %v1234_v0  ;;  %vm1662_vm2 = vcmask 588800  }
 0x2e1   : > { %v1085_v45 = vpop.permute.xlu1 %1084 }
 0x2e2   : > { %v1097_v61 = vperm.slane %v1085_v45, %v2264_v48 }
 0x2e4   : > { %1326 = vadd.xlane.f32.xlu1 %v1325_v18  ;;  %v1104_v3 = vsel %vm670_vm8, %v1097_v61, %v1103_v2 }
 0x2e5   : > { %v1105_v36 = vsel %vm672_vm9, %v1098_v38, %v1104_v3 }
 0x2e6   : > { %v1106_v10 = vsel %vm674_vm10, %v1099_v28, %v1105_v36  ;;  %v1965_v36 = vld [vmem:[%s2363_s18 + $0xc] sm:$0xf] }
 0x2e7   : > { %v1108_v33 = vadd.f32 %v1106_v10, %v1067_v54  ;;  %v1447_v28 = vsel %vm552_vm0, %v1965_v36, 0  ;;  %v509_v54 = vld [vmem:[%s2173_s25] sm:$0xf]  ;;  %v511_v10 = vld [vmem:[%s2173_s25 + $0x8] sm:$0xf] }
 0x2e8   : > { %1456 = vmatpush.bf16.msra.mxu2 %v1447_v28 }
 0x2ea   : > { %v2413_v19 = vpop.f32.mrf.mxu3 }
 0x2f2   : > { %v805_v20 = vpop.f32.mrf.mxu3 }
 0x2f3   : > { %v1348_v20 = vpop.trf.xlu2 }
 0x2f4   : > { %v1364_v31 = vperm.slane %v1348_v20, 0 }
 0x2fa   : > { %v2415_v22 = vpop.f32.mrf.mxu3 }
 0x302   : > { %v821_v25 = vpop.f32.mrf.mxu3 }
 0x30c   : > { %v1114_v43 = vpop.xlane.xlu1 %1113 }
 0x30d   : > { %v1152_v8 = vadd.f32 %v1151_v4, %v1114_v43  ;;  %v1280_v43 = vmul.f32 0.14433756, %v2417_v29  ;;  %v1951_v4 = vld [vmem:[%s2353_s12 + $0x8] sm:$0xf] }
 0x324   : > { %v1283_v30 = vpop.permute.xlu1 %1282 }
 0x325   : > { %v1305_v5 = vperm.slane %v1283_v30, %v2264_v48 }
 0x327   : > { %v1313_v11 = vsel %vm662_vm4, %v1306_v47, %v1305_v5  ;;  %v1218_v5 = vsel %vm552_vm0, %v1951_v4, 0  ;;  %v1962_v47 = vld [vmem:[%s2353_s12 + $0xc] sm:$0xf]  ;;  %vm1739_vm4 = vcmask 785408  }
 0x328   : > { %v1314_v63 = vsel %vm664_vm5, %v1307_v49, %v1313_v11  ;;  %1227 = vmatpush.bf16.msrb.mxu1 %v1218_v5  ;;  %v1431_v6 = vsel %vm552_vm0, %v1962_v47, 0  ;;  %v1520_v49 = vsel %vm552_vm0, %v511_v10, 0 }
 0x329   : > { %v1315_v17 = vsel %vm666_vm6, %v1308_v16, %v1314_v63  ;;  %v514_v16 = vld [vmem:[%s2173_s25 + $0x14] sm:$0xf] }
 0x32c   : > { %v1295_v40 = vpop.permute.xlu1 %1294  ;;  %1440 = vmatpush.bf16.msra.mxu1 %v1431_v6 }
 0x32d   : > { %v1309_v14 = vperm.slane %v1295_v40, %v2264_v48 }
 0x32f   : > { %v1316_v23 = vsel %vm668_vm7, %v1309_v14, %v1315_v17  ;;  %v1577_v17 = vsel %vm552_vm0, %v514_v16, 0 }
 0x330   : > { %v1317_v32 = vsel %vm670_vm8, %v1310_v26, %v1316_v23 }
 0x331   : > { %v1318_v37 = vsel %vm672_vm9, %v1311_v35, %v1317_v32 }
 0x332   : > { %v1319_v42 = vsel %vm674_vm10, %v1312_v41, %v1318_v37 }
 0x333   : > { %v1321_v56 = vadd.f32 %v1319_v42, %v1280_v43 }
 0x33a   : > { %v2419_v46 = vpop.f32.mrf.mxu1 }
 0x340   : > { %v2421_v50 = vpop.f32.mrf.mxu3 }
 0x342   : > { %v1034_v53 = vpop.f32.mrf.mxu1 }
 0x343   : > { %v1388_v53 = vstv %s1968_s11 }
 0x348   : > { %v1018_v24 = vpop.f32.mrf.mxu3 }
 0x350   : > { %v1168_v7 = vpop.f32.mrf.mxu3 }
 0x351   : > { %v1172_v9 = vmul.f32 2.0, %v1168_v7  ;;  %v510_v7 = vld [vmem:[%s2173_s25 + $0x4] sm:$0xf] }
 0x353   : > { %v1173_v21 = vsub.f32 %v1152_v8, %v1172_v9  ;;  %v1482_v8 = vsel %vm552_vm0, %v509_v54, 0  ;;  %v512_v9 = vld [vmem:[%s2173_s25 + $0xc] sm:$0xf] }
 0x354   : > { %1491 = vmatpush.bf16.msra.mxu0 %v1482_v8 }
 0x355   : > { %v1176_v15 = vmul.f32 %v1175_v12, %v1173_v21  ;;  %v1539_v12 = vsel %vm552_vm0, %v512_v9, 0 }
 0x357   : > { %v1177_v13 = vsub.f32 %v1108_v33, %v1176_v15  ;;  %v1327_v34 = vpop.xlane.xlu1 %1326 }
 0x358   : > { %v1170_v18 = vpop.f32.mrf.mxu3  ;;  %v1365_v39 = vadd.f32 %v1364_v31, %v1327_v34  ;;  %v515_v31 = vld [vmem:[%s2173_s25 + $0x18] sm:$0xf] }
 0x359   : > { %v1178_v25 = vadd.f32 %v2306_v44, %v1177_v13  ;;  %v513_v18 = vld [vmem:[%s2173_s25 + $0x10] sm:$0xf]  ;;  %v1596_v37 = vsel %vm552_vm0, %v515_v31, 0 }
 0x35a   : > { %v1558_v23 = vsel %vm552_vm0, %v513_v18, 0 }
 0x35b   : > { %v1179_v27 = vsel %vm539_vm1, %v1178_v25, -inf  ;;  %1567 = vmatpush.bf16.msrb.mxu0 %v1558_v23 }
 0x35c   : > { %1180 = vmax.xlane.f32.xlu1 %v1179_v27  ;;  %v516_v27 = vld [vmem:[%s2173_s25 + $0x1c] sm:$0xf]  ;;  %s2088_s25 = smov 32  }
 0x35d   : > { %v1615_v35 = vsel %vm552_vm0, %v516_v27, 0 }
 0x360   : > { %v1381_v45 = vpop.f32.mrf.mxu3 }
 0x361   : > { %v1385_v52 = vmul.f32 2.0, %v1381_v45 }
 0x363   : > { %v1386_v55 = vsub.f32 %v1365_v39, %v1385_v52 }
 0x365   : > { %v1389_v57 = vmul.f32 %v1388_v53, %v1386_v55 }
 0x367   : > { %v1390_v58 = vsub.f32 %v1321_v56, %v1389_v57 }
 0x368   : > { %v1383_v59 = vpop.f32.mrf.mxu3 }
 0x369   : > { %v1391_v51 = vadd.f32 %v2306_v44, %v1390_v58 }
 0x36b   : > { %v1392_v60 = vsel %vm539_vm1, %v1391_v51, -inf }
 0x36c   : > { %1393 = vmax.xlane.f32.xlu0 %v1392_v60 }
 0x3cf   : > { %v1181_v61 = vpop.xlane.xlu1 %1180 }
 0x3d0   : > { %v1182_v48 = vsub.f32 %v1178_v25, %v1181_v61 }
 0x3d2   : > { %v1183_v30 = vmul.f32 1.442695, %v1182_v48 }
 0x3d4   : > { %2046 = vpow2.f32 %v1183_v30 }
 0x3da   : > { %v2047_v29 = vpop.eup %2046 }
 0x3db   : > { %v1185_v24 = vsel %vm539_vm1, %v2047_v29, 0.0 }
 0x3dc   : > { %1186 = vadd.xlane.f32.xlu1 %v1185_v24 }
 0x3df   : > { %v1394_v1 = vpop.xlane.xlu0 %1393 }
 0x3e0   : > { %v1395_v2 = vsub.f32 %v1391_v51, %v1394_v1 }
 0x3e2   : > { %v1396_v44 = vmul.f32 1.442695, %v1395_v2 }
 0x3e4   : > { %2048 = vpow2.f32 %v1396_v44 }
 0x3ea   : > { %v2049_v3 = vpop.eup %2048 }
 0x3eb   : > { %v1398_v38 = vsel %vm539_vm1, %v2049_v3, 0.0 }
 0x3ec   : > { %1399 = vadd.xlane.f32.xlu2 %v1398_v38 }
 0x3f5   : > { %1631 = vrot.lane.b32.xlu1 %v2421_v50, %s2086_s16  ;;  %v1501_v50 = vsel %vm552_vm0, %v510_v7, 0  ;;  %vm1659_vm0 = vcmask 195584  }
 0x3f6   : > { %1510 = vmatpush.bf16.msrb.mxu3 %v1501_v50 }
 0x3fa   : > { %1586 = vmatpush.bf16.msra.mxu3 %v1577_v17 }
 0x3fd   : > { %1648 = vrot.lane.b32.xlu1 %v2419_v46, %s2087_s19 }
 0x44f   : > { %v1187_v46 = vpop.xlane.xlu1 %1186 }
 0x450   : > { %2050 = vrcp.f32 %v1187_v46 }
 0x456   : > { %v2051_v11 = vpop.eup %2050 }
 0x457   : > { %v1189_v40 = vmul.f32 %v2051_v11, %v2047_v29 }
 0x459   : > { %v1213_v21 = vpack.c.bf16 %v1189_v40, %v1189_v40  ;;  %1205 = vst.msk [vmem:[#allocation2 + $0x2] sm:$0x1] %vm778_vm11, %v1189_v40  ;;  %v1191_v33 = vrot.slane %v1189_v40, 1  ;;  %v1192_v63 = vrot.slane %v1189_v40, 2  ;;  %v1193_v14 = vrot.slane %v1189_v40, 3 }
 0x45a   : > { %v1194_v15 = vrot.slane %v1189_v40, 4  ;;  %v1195_v13 = vrot.slane %v1189_v40, 5  ;;  %v1196_v20 = vrot.slane %v1189_v40, 6  ;;  %v1197_v25 = vrot.slane %v1189_v40, 7 }
 0x45b   : > { %1958 = vmatmul.msk.bf16.vlgmr.msrb.gmra.mxu1 %vm539_vm1, %v1213_v21  ;;  %1959 = vmatmul.msk.bf16.vlgmr.msrb.gmra.mxu2 %vm539_vm1, %v1213_v21  ;;  %1206 = vst.msk [vmem:[#allocation2 + $0x6] sm:$0x1] %vm778_vm11, %v1191_v33 }
 0x45c   : > { %1548 = vmatpush.bf16.msrb.mxu2 %v1539_v12  ;;  %1529 = vmatpush.bf16.msrb.mxu1 %v1520_v49  ;;  %1207 = vst.msk [vmem:[#allocation2 + $0xa] sm:$0x1] %vm778_vm11, %v1192_v63  ;;  %v2091_v12 = vmov 1983009808  }
 0x45d   : > { %1208 = vst.msk [vmem:[#allocation2 + $0xe] sm:$0x1] %vm778_vm11, %v1193_v14  ;;  %v1668_v49 = vunpack.c.l.s4 %v2091_v12 }
 0x45e   : > { %1209 = vst.msk [vmem:[#allocation2 + $0x12] sm:$0x1] %vm778_vm11, %v1194_v15 }
 0x45f   : > { %v1400_v26 = vpop.xlane.xlu2 %1399  ;;  %1210 = vst.msk [vmem:[#allocation2 + $0x16] sm:$0x1] %vm778_vm11, %v1195_v13  ;;  %v1669_v33 = vunpack.c.0.s8 %v1668_v49 }
 0x460   : > { %2052 = vrcp.f32 %v1400_v26  ;;  %1211 = vst.msk [vmem:[#allocation2 + $0x1a] sm:$0x1] %vm778_vm11, %v1196_v20  ;;  %v2092_v26 = vmov 1934713408  }
 0x461   : > { %1212 = vst.msk [vmem:[#allocation2 + $0x1e] sm:$0x1] %vm778_vm11, %v1197_v25  ;;  %v1694_v27 = vunpack.c.l.s4 %v2092_v26 }
 0x466   : > { %v2053_v32 = vpop.eup %2052 }
 0x467   : > { %v1402_v34 = vmul.f32 %v2053_v32, %v2049_v3 }
 0x469   : > { %v1426_v39 = vpack.c.bf16 %v1402_v34, %v1402_v34  ;;  %1418 = vst.msk [vmem:[#allocation2 + $0x3] sm:$0x1] %vm778_vm11, %v1402_v34  ;;  %v1404_v41 = vrot.slane %v1402_v34, 1  ;;  %v1405_v45 = vrot.slane %v1402_v34, 2  ;;  %v1406_v43 = vrot.slane %v1402_v34, 3 }
 0x46a   : > { %v1407_v52 = vrot.slane %v1402_v34, 4  ;;  %v1408_v42 = vrot.slane %v1402_v34, 5  ;;  %v1409_v53 = vrot.slane %v1402_v34, 6  ;;  %v1410_v55 = vrot.slane %v1402_v34, 7 }
 0x46b   : > { %1969 = vmatmul.msk.bf16.vlgmr.msra.gmra.mxu1 %vm539_vm1, %v1426_v39  ;;  %1970 = vmatmul.msk.bf16.vlgmr.msra.gmra.mxu2 %vm539_vm1, %v1426_v39  ;;  %1419 = vst.msk [vmem:[#allocation2 + $0x7] sm:$0x1] %vm778_vm11, %v1404_v41 }
 0x46c   : > { %1420 = vst.msk [vmem:[#allocation2 + $0xb] sm:$0x1] %vm778_vm11, %v1405_v45  ;;  %1624 = vmatpush.bf16.msra.mxu2 %v1615_v35  ;;  %1605 = vmatpush.bf16.msra.mxu1 %v1596_v37 }
 0x46d   : > { %1421 = vst.msk [vmem:[#allocation2 + $0xf] sm:$0x1] %vm778_vm11, %v1406_v43  ;;  %v1695_v43 = vunpack.c.0.s8 %v1694_v27 }
 0x46e   : > { %1422 = vst.msk [vmem:[#allocation2 + $0x13] sm:$0x1] %vm778_vm11, %v1407_v52 }
 0x46f   : > { %1423 = vst.msk [vmem:[#allocation2 + $0x17] sm:$0x1] %vm778_vm11, %v1408_v42 }
 0x470   : > { %v1462_v56 = vld [vmem:[#allocation2] sm:$0xf]  ;;  %1424 = vst.msk [vmem:[#allocation2 + $0x1b] sm:$0x1] %vm778_vm11, %v1409_v53 }
 0x471   : > { %v1470_v57 = vpack.c.bf16 %v1462_v56, %v1462_v56  ;;  %1425 = vst.msk [vmem:[#allocation2 + $0x1f] sm:$0x1] %vm778_vm11, %v1410_v55 }
 0x472   : > { %v1463_v58 = vld [vmem:[#allocation2 + $0x4] sm:$0xf] }
 0x473   : > { %1971 = vmatmul.msk.bf16.vlgmr.msra.gmra.mxu0 %vm539_vm1, %v1470_v57  ;;  %v1471_v59 = vpack.c.bf16 %v1463_v58, %v1463_v58  ;;  %v1464_v51 = vld [vmem:[#allocation2 + $0x8] sm:$0xf] }
 0x474   : > { %v1465_v60 = vld [vmem:[#allocation2 + $0xc] sm:$0xf]  ;;  %v1472_v61 = vpack.c.bf16 %v1464_v51, %v1464_v51 }
 0x475   : > { %1972 = vmatmul.msk.bf16.vlgmr.msrb.gmra.mxu3 %vm539_vm1, %v1471_v59  ;;  %v1473_v48 = vpack.c.bf16 %v1465_v60, %v1465_v60  ;;  %v1466_v30 = vld [vmem:[#allocation2 + $0x10] sm:$0xf] }
 0x476   : > { %v1467_v29 = vld [vmem:[#allocation2 + $0x14] sm:$0xf]  ;;  %v1474_v24 = vpack.c.bf16 %v1466_v30, %v1466_v30 }
 0x477   : > { %v1475_v62 = vpack.c.bf16 %v1467_v29, %v1467_v29  ;;  %v1468_v0 = vld [vmem:[#allocation2 + $0x18] sm:$0xf] }
 0x478   : > { %v1469_v1 = vld [vmem:[#allocation2 + $0x1c] sm:$0xf]  ;;  %v1476_v2 = vpack.c.bf16 %v1468_v0, %v1468_v0 }
 0x479   : > { %v1477_v44 = vpack.c.bf16 %v1469_v1, %v1469_v1 }
 0x47b   : > { %1973 = vmatmul.msk.bf16.vlgmr.msrb.gmra.mxu1 %vm539_vm1, %v1472_v61  ;;  %1974 = vmatmul.msk.bf16.vlgmr.msrb.gmra.mxu2 %vm539_vm1, %v1473_v48 }
 0x483   : > { %1975 = vmatmul.msk.bf16.vlgmr.msrb.gmra.mxu0 %vm539_vm1, %v1474_v24 }
 0x485   : > { %1976 = vmatmul.msk.bf16.vlgmr.msra.gmra.mxu3 %vm539_vm1, %v1475_v62 }
 0x48b   : > { %1977 = vmatmul.msk.bf16.vlgmr.msra.gmra.mxu1 %vm539_vm1, %v1476_v2  ;;  %1978 = vmatmul.msk.bf16.vlgmr.msra.gmra.mxu2 %vm539_vm1, %v1477_v44 }
 0x4d8   : > { %v1229_v3 = vpop.f32.mrf.mxu1 }
 0x4d9   : > { %1635 = vrot.lane.b32.xlu1 %v1229_v3, %s2088_s25  ;;  %v1632_v3 = vpop.permute.xlu1 %1631 }
 0x4de   : > { %v1245_v38 = vpop.f32.mrf.mxu2 }
 0x4e0   : > { %v1231_v4 = vpop.f32.mrf.mxu1 }
 0x4e1   : > { %1652 = vrot.lane.b32.xlu1 %v1245_v38, %s2089_s20  ;;  %v1649_v38 = vpop.permute.xlu1 %1648 }
 0x4e6   : > { %v1247_v5 = vpop.f32.mrf.mxu2 }
 0x4e8   : > { %v1442_v36 = vpop.f32.mrf.mxu1 }
 0x4e9   : > { %1639 = vrot.lane.b32.xlu1 %v1442_v36, %s2089_s20  ;;  %v1642_v36 = vsel %vm599_vm3, %v2413_v19, %v1632_v3 }
 0x4ee   : > { %v1458_v28 = vpop.f32.mrf.mxu2 }
 0x4f0   : > { %v1444_v47 = vpop.f32.mrf.mxu1  ;;  %v1493_v6 = vpop.f32.mrf.mxu0 }
 0x4f1   : > { %1656 = vrot.lane.b32.xlu1 %v1458_v28, %s2090_s21 }
 0x4f6   : > { %v1460_v7 = vpop.f32.mrf.mxu2 }
 0x4f8   : > { %v1495_v50 = vpop.f32.mrf.mxu0  ;;  %v1512_v54 = vpop.f32.mrf.mxu3 }
 0x4f9   : > { %v1531_v46 = vpop.f32.mrf.mxu1  ;;  %v1660_v50 = vsel %vm1659_vm0, %v2415_v22, %v1649_v38 }
 0x4fa   : > { %v1664_v14 = vrot.slane %v1531_v46, 4 }
 0x4fc   : > { %v1666_v20 = vsel %vm1665_vm12, %v1664_v14, %v1493_v6 }
 0x4fd   : > { %v1670_v31 = vperm.slane %v1666_v20, %v1669_v33 }
 0x4fe   : > { %v1550_v8 = vpop.f32.mrf.mxu2 }
 0x4ff   : > { %v1671_v11 = vrot.slane %v1550_v8, 4  ;;  %v1691_v30 = vrot.slane %v1670_v31, 4 }
 0x500   : > { %v1514_v9 = vpop.f32.mrf.mxu3  ;;  %v1569_v10 = vpop.f32.mrf.mxu0 }
 0x501   : > { %v1533_v40 = vpop.f32.mrf.mxu1  ;;  %v1672_v21 = vsel %vm1665_vm12, %v1671_v11, %v1512_v54 }
 0x502   : > { %v1676_v15 = vperm.slane %v1672_v21, %v1669_v33 }
 0x504   : > { %v1689_v23 = vrot.slane %v1676_v15, 4  ;;  %v1692_v24 = vsel %vm1665_vm12, %v1676_v15, %v1691_v30 }
 0x505   : > { %v1700_v0 = vperm.slane %v1692_v24, %v1695_v43 }
 0x506   : > { %v1552_v63 = vpop.f32.mrf.mxu2  ;;  %v1690_v39 = vsel %vm1665_vm12, %v1689_v23, %v1670_v31 }
 0x507   : > { %v1696_v42 = vperm.slane %v1690_v39, %v1695_v43  ;;  %v1719_v2 = vrot.slane %v1700_v0, 4 }
 0x508   : > { %v1571_v16 = vpop.f32.mrf.mxu0  ;;  %v1588_v13 = vpop.f32.mrf.mxu3 }
 0x509   : > { %v1607_v17 = vpop.f32.mrf.mxu1  ;;  %v1715_v51 = vrot.slane %v1696_v42, 4 }
 0x50a   : > { %v1677_v18 = vrot.slane %v1607_v17, 4 }
 0x50c   : > { %v1678_v25 = vsel %vm1665_vm12, %v1677_v18, %v1569_v10 }
 0x50d   : > { %v1682_v35 = vperm.slane %v1678_v25, %v1669_v33 }
 0x50e   : > { %v1626_v32 = vpop.f32.mrf.mxu2 }
 0x50f   : > { %v1683_v34 = vrot.slane %v1626_v32, 4  ;;  %v1703_v53 = vrot.slane %v1682_v35, 4 }
 0x510   : > { %v1590_v37 = vpop.f32.mrf.mxu3 }
 0x511   : > { %v1684_v41 = vsel %vm1665_vm12, %v1683_v34, %v1588_v13  ;;  %v1609_v45 = vpop.f32.mrf.mxu1 }
 0x512   : > { %v1688_v52 = vperm.slane %v1684_v41, %v1669_v33 }
 0x514   : > { %v1701_v55 = vrot.slane %v1688_v52, 4  ;;  %v1704_v58 = vsel %vm1665_vm12, %v1688_v52, %v1703_v53 }
 0x515   : > { %v1712_v48 = vperm.slane %v1704_v58, %v1695_v43 }
 0x516   : > { %v1628_v56 = vpop.f32.mrf.mxu2  ;;  %v1702_v57 = vsel %vm1665_vm12, %v1701_v55, %v1682_v35 }
 0x517   : > { %v1708_v59 = vperm.slane %v1702_v57, %v1695_v43  ;;  %v1717_v62 = vrot.slane %v1712_v48, 4  ;;  %v1720_v44 = vsel %vm1665_vm12, %v1712_v48, %v1719_v2 }
 0x519   : > { %v1716_v60 = vsel %vm1665_vm12, %v1708_v59, %v1715_v51  ;;  %v1713_v61 = vrot.slane %v1708_v59, 4  ;;  %v1718_v1 = vsel %vm1665_vm12, %v1717_v62, %v1700_v0 }
 0x51a   : > { %1722 = vrot.lane.b32.xlu1 %v1716_v60, %s2093_s23 }
 0x51b   : > { %v1714_v29 = vsel %vm1665_vm12, %v1713_v61, %v1696_v42 }
 0x522   : > { %1726 = vrot.lane.b32.xlu1 %v1718_v1, %s2086_s16 }
 0x52a   : > { %1730 = vrot.lane.b32.xlu1 %v1720_v44, %s2087_s19 }
 0x54b   : > { %v1636_v4 = vpop.permute.xlu1 %1635 }
 0x54c   : > { %v1644_v28 = vsel %vm1643_vm13, %v1642_v36, %v1636_v4 }
 0x553   : > { %v1653_v5 = vpop.permute.xlu1 %1652 }
 0x554   : > { %v1661_v54 = vsel %vm1645_vm15, %v1660_v50, %v1653_v5 }
 0x55b   : > { %v1640_v47 = vpop.permute.xlu1 %1639 }
 0x55c   : > { %v1646_v6 = vsel %vm1645_vm15, %v1644_v28, %v1640_v47 }
 0x55d   : > { %v1737_v7 = vsel %vm1736_vm14, %v1646_v6, 0.0 }
 0x55e   : > { %1738 = vst [vmem:[%s507_s28] sm:$0xff] %v1737_v7 }
 0x563   : > { %v1657_v46 = vpop.permute.xlu1 %1656 }
 0x564   : > { %v1663_v19 = vsel %vm1662_vm2, %v1661_v54, %v1657_v46 }
 0x565   : > { %v1740_v8 = vsel %vm1739_vm4, %v1663_v19, 0.0 }
 0x566   : > { %1741 = vst [vmem:[%s507_s28 + $0x8] sm:$0xff] %v1740_v8 }
 0x58c   : > { %v1723_v9 = vpop.permute.xlu1 %1722 }
 0x58d   : > { %v1733_v11 = vsel %vm539_vm1, %v1714_v29, %v1723_v9 }
 0x594   : > { %v1727_v10 = vpop.permute.xlu1 %1726 }
 0x595   : > { %v1734_v40 = vsel %vm599_vm3, %v1733_v11, %v1727_v10 }
 0x59c   : > { %v1731_v12 = vpop.permute.xlu1 %1730 }
 0x59d   : > { %v1735_v49 = vsel %vm1659_vm0, %v1734_v40, %v1731_v12 }
 0x59e   : > { %v1742_v21 = vsel %vm1643_vm13, %v1735_v49, 0.0 }
 0x59f   : > { %1743 = vst [vmem:[%s507_s28 + $0x10] sm:$0xff] %v1742_v21 }
 0x5a0 PF: > { %s21_s13 = sadd.s32 1, %s2079_s13  }
 0x5a1   : > { %p18_p7 = scmp.ge.s32.totalorder %s21_s13, 4  }
 0x5a3   :  { %20 = sbr.rel (!%p18_p7) target bundleno = 1 (0x1), region = 134 }
 0x5a8   :  { %1765 = vsyncpa [#allocation4], 1 }
 0x5a9   :  { %1767 = vsyncpa [#allocation4 + $0x1], 1 }

</bundles_post_ra>
